<compile_context>
chip_gen: v7x
topology: tpu7x:2x2x1
jax: 0.10.0
libtpu: 0.0.40
codegen_flags: <defaults>
</compile_context>

<pallas_src>
import functools

import jax
import jax.numpy as jnp
from jax.experimental import pallas as pl
from jax.experimental.pallas import tpu as pltpu


def _shift_lanes(x, k):
    """out[:, s] = x[:, s + k] for 0 <= s + k < S, else 0.  k is a static Python int.

    Lane-axis shift via slice + zero-fill concat (a single XLU lane-shift copy).
    Flat out-of-range positions (vertical conv halo) are zero-filled here; only the
    horizontal wrap needs an extra mask (applied by the caller).
    """
    if k == 0:
        return x
    c, s = x.shape
    pad = jnp.zeros((c, abs(k)), x.dtype)
    if k > 0:
        return jnp.concatenate([x[:, k:], pad], axis=1)
    return jnp.concatenate([pad, x[:, :s + k]], axis=1)


def _double_conv_kernel(H, W, x_ref, w1_ref, w2_ref, p_ref, o_ref):
    """Fused (conv3x3 -> ReLU -> BN) x 2, channels-first, everything resident in VMEM.

    x_ref : (N, Cin, H*W)  f32   activations, spatial flattened on the lane axis
    w1_ref: (9, C1, Cin)   bf16  conv1 weight, tap-major (ky*3+kx)
    w2_ref: (9, C2, C1)    bf16  conv2 weight, tap-major (ky*3+kx)
    p_ref : (C, 6)         f32   columns = [b1, g1, beta1, b2, g2, beta2]
    o_ref : (N, C2, H*W)   f32   (lane-dense: H*W is a multiple of 128 at UNet shapes)
    """
    N, Cin, S = x_ref.shape
    C1 = w1_ref.shape[1]
    C2 = w2_ref.shape[1]
    inv_count = 1.0 / float(N * S)

    # Per-channel parameter columns: (C, 1) broadcasts along the lane (spatial) axis.
    pv = p_ref[...]
    b1, g1, beta1 = pv[:, 0:1], pv[:, 1:2], pv[:, 2:3]
    b2, g2, beta2 = pv[:, 3:4], pv[:, 4:5], pv[:, 5:6]

    w1 = w1_ref[...]
    w2 = w2_ref[...]

    # Horizontal-validity masks over the flattened spatial lanes (hoisted once, shared
    # by both layers and all images).  Vertical out-of-range taps are already zero-filled
    # by _shift_lanes.
    wpos = jax.lax.broadcasted_iota(jnp.int32, (1, S), 1) % W
    wmask = {-1: wpos >= 1, 0: None, 1: wpos <= W - 2}

    ones_col = jnp.ones((S, 1), jnp.float32)

    def conv_relu(img, w_taps, bias_col):
        """img (Cin_l, S) f32; w_taps (9, Cout_l, Cin_l) bf16 -> relu(conv3x3 + bias), f32."""
        acc = None
        for ky in range(3):
            for kx in range(3):
                dy, dx = ky - 1, kx - 1
                tap = _shift_lanes(img, dy * W + dx)
                if wmask[dx] is not None:
                    tap = jnp.where(wmask[dx], tap, 0.0)
                part = jnp.dot(w_taps[ky * 3 + kx], tap.astype(jnp.bfloat16),
                               preferred_element_type=jnp.float32)
                acc = part if acc is None else acc + part
        return jnp.maximum(acc + bias_col, 0.0)

    def channel_stats(y):
        """Per-channel [sum; sum_sq] via one MXU dot (contraction over the lane axis)."""
        return jnp.dot(jnp.concatenate([y, y * y], axis=0), ones_col,
                       preferred_element_type=jnp.float32)

    def bn_scale_shift(stats, c, gamma_col, beta_col):
        mean = stats[:c] * inv_count
        mean_sq = stats[c:] * inv_count
        # TODO(synk): E[y^2]-E[y]^2 can cancel at production scale; use a centered /
        # Welford accumulation in the gridded stats pass.
        var = jnp.maximum(mean_sq - mean * mean, 0.0)
        scale = gamma_col * jax.lax.rsqrt(var + 1e-5)
        return scale, beta_col - mean * scale

    # ---- Layer 1: conv -> bias -> ReLU per image, accumulating BN stats. ----
    y1 = []
    stats1 = jnp.zeros((2 * C1, 1), jnp.float32)
    for n in range(N):
        yn = conv_relu(x_ref[n], w1, b1)
        y1.append(yn)
        stats1 = stats1 + channel_stats(yn)
    sc1, sh1 = bn_scale_shift(stats1, C1, g1, beta1)

    # ---- Layer 2: BN1 (folded scale/shift) -> conv -> bias -> ReLU, accumulating stats. ----
    y2 = []
    stats2 = jnp.zeros((2 * C2, 1), jnp.float32)
    for n in range(N):
        zn = y1[n] * sc1 + sh1
        yn = conv_relu(zn, w2, b2)
        y2.append(yn)
        stats2 = stats2 + channel_stats(yn)
    sc2, sh2 = bn_scale_shift(stats2, C2, g2, beta2)

    # ---- BN2 (folded) + lane-dense store. ----
    for n in range(N):
        o_ref[n] = (y2[n] * sc2 + sh2).astype(o_ref.dtype)


def _reorder_weight(w_oihw):
    """(Cout, Cin, 3, 3) -> (9, Cout, Cin) bf16, tap-major (ky*3 + kx)."""
    cout, cin = w_oihw.shape[0], w_oihw.shape[1]
    return jnp.transpose(w_oihw, (2, 3, 0, 1)).reshape(9, cout, cin).astype(jnp.bfloat16)


@jax.jit
def double_conv_forward(x_nchw, params):
    """double_conv forward: (N, Cin, H, W) float32 -> (N, Cout, H, W) float32."""
    N, Cin, H, W = x_nchw.shape
    C2 = params["w2"].shape[0]
    S = H * W

    # Lane-dense slabs: NCHW -> (N, C, H*W) is a free reshape (no HBM transpose pass).
    x = x_nchw.reshape(N, Cin, S)

    # Pack the six per-channel vectors into one (C, 6) array: one small DMA and
    # ready-made (C, 1) broadcast columns inside the kernel (C1 == C2 for this module).
    p = jnp.stack([params["b1"], params["g1"], params["beta1"],
                   params["b2"], params["g2"], params["beta2"]], axis=1).astype(jnp.float32)

    # Derive the VMEM budget from the actual resident f32 buffers (x, y1, y2, out) with
    # generous headroom for compiler scratch; clamp to the 32 MiB default floor (safe on
    # all generations incl. v7x) and below v5e/v6e physical VMEM.
    resident = 4 * (N * Cin * S + 3 * N * C2 * S)
    vmem_limit = int(min(max(8 * resident, 32 * 1024 * 1024), 100 * 1024 * 1024))

    vmem = pl.BlockSpec(memory_space=pltpu.MemorySpace.VMEM)
    out = pl.pallas_call(
        functools.partial(_double_conv_kernel, H, W),
        out_shape=jax.ShapeDtypeStruct((N, C2, S), jnp.float32),
        in_specs=[vmem] * 4,
        out_specs=vmem,
        compiler_params=pltpu.CompilerParams(vmem_limit_bytes=vmem_limit),
    )(x, _reorder_weight(params["w1"]), _reorder_weight(params["w2"]), p)

    return out.reshape(N, C2, H, W)  # free reshape back to NCHW


def init_params(key, in_channel, out_channel):
    """Deterministic parameter init matching the PyTorch module's shapes."""
    k1, k2, k3, k4 = jax.random.split(key, 4)
    bound1 = 1.0 / jnp.sqrt(in_channel * 9)
    bound2 = 1.0 / jnp.sqrt(out_channel * 9)
    return {
        "w1": jax.random.uniform(k1, (out_channel, in_channel, 3, 3), jnp.float32,
                                 -bound1, bound1),
        "b1": jax.random.uniform(k2, (out_channel,), jnp.float32, -bound1, bound1),
        "g1": jnp.ones((out_channel,), jnp.float32),
        "beta1": jnp.zeros((out_channel,), jnp.float32),
        "w2": jax.random.uniform(k3, (out_channel, out_channel, 3, 3), jnp.float32,
                                 -bound2, bound2),
        "b2": jax.random.uniform(k4, (out_channel,), jnp.float32, -bound2, bound2),
        "g2": jnp.ones((out_channel,), jnp.float32),
        "beta2": jnp.zeros((out_channel,), jnp.float32),
    }


def _reference(x_nchw, params):
    """Pure-JAX f32 reference (lax conv) matching the PyTorch module's forward."""
    def block(x, w, b, g, beta):
        y = jax.lax.conv_general_dilated(
            x, w, window_strides=(1, 1), padding=((1, 1), (1, 1)),
            dimension_numbers=("NCHW", "OIHW", "NCHW"))
        y = y + b[None, :, None, None]
        y = jnp.maximum(y, 0.0)
        mean = jnp.mean(y, axis=(0, 2, 3), keepdims=True)
        var = jnp.mean((y - mean) ** 2, axis=(0, 2, 3), keepdims=True)
        y = (y - mean) * jax.lax.rsqrt(var + 1e-5)
        return y * g[None, :, None, None] + beta[None, :, None, None]

    x = block(x_nchw, params["w1"], params["b1"], params["g1"], params["beta1"])
    x = block(x, params["w2"], params["b2"], params["g2"], params["beta2"])
    return x


if __name__ == "__main__":
    key = jax.random.PRNGKey(0)
    kx_, kp = jax.random.split(key)

    in_channel, out_channel = 4, 8
    x = jax.random.normal(kx_, (2, in_channel, 16, 16), jnp.float32)  # NCHW
    params = init_params(kp, in_channel, out_channel)

    out = double_conv_forward(x, params)
    out = jax.block_until_ready(out)

    ref = _reference(x, params)
    assert out.shape == (2, out_channel, 16, 16)
    # bf16 MXU operands (f32 accumulation) vs. the all-f32 reference: after two
    # BN-normalized conv layers the expected max-abs deviation is a few 1e-2.
    err = float(jnp.max(jnp.abs(out - ref)))
    assert err < 6e-2, f"mismatch vs JAX reference: {err}"

    print("KERNEL_OK")
</pallas_src>

<mosaic_0001>
module attributes {stable_mosaic.version = 11 : i64} {
  func.func @_double_conv_kernel(%arg0: memref<2x4x256xf32, #tpu.memory_space<vmem>>, %arg1: memref<9x8x4xbf16, #tpu.memory_space<vmem>>, %arg2: memref<9x8x8xbf16, #tpu.memory_space<vmem>>, %arg3: memref<8x6xf32, #tpu.memory_space<vmem>>, %arg4: memref<2x8x256xf32, #tpu.memory_space<vmem>>) attributes {dimension_semantics = [], scalar_prefetch = 0 : i64, scratch_operands = 0 : i64, tpu.core_type = #tpu.core_type<tc>} {
    %c0 = arith.constant 0 : index
    %c0_0 = arith.constant 0 : index
    %0 = vector.load %arg3[%c0, %c0_0] : memref<8x6xf32, #tpu.memory_space<vmem>>, vector<8x6xf32>
    %1 = vector.extract_strided_slice %0 {offsets = [0, 0], sizes = [8, 1], strides = [1, 1]} : vector<8x6xf32> to vector<8x1xf32>
    %2 = vector.extract_strided_slice %0 {offsets = [0, 1], sizes = [8, 1], strides = [1, 1]} : vector<8x6xf32> to vector<8x1xf32>
    %3 = vector.extract_strided_slice %0 {offsets = [0, 2], sizes = [8, 1], strides = [1, 1]} : vector<8x6xf32> to vector<8x1xf32>
    %4 = vector.extract_strided_slice %0 {offsets = [0, 3], sizes = [8, 1], strides = [1, 1]} : vector<8x6xf32> to vector<8x1xf32>
    %5 = vector.extract_strided_slice %0 {offsets = [0, 4], sizes = [8, 1], strides = [1, 1]} : vector<8x6xf32> to vector<8x1xf32>
    %6 = vector.extract_strided_slice %0 {offsets = [0, 5], sizes = [8, 1], strides = [1, 1]} : vector<8x6xf32> to vector<8x1xf32>
    %c0_1 = arith.constant 0 : index
    %c0_2 = arith.constant 0 : index
    %c0_3 = arith.constant 0 : index
    %7 = vector.load %arg1[%c0_1, %c0_2, %c0_3] : memref<9x8x4xbf16, #tpu.memory_space<vmem>>, vector<9x8x4xbf16>
    %c0_4 = arith.constant 0 : index
    %c0_5 = arith.constant 0 : index
    %c0_6 = arith.constant 0 : index
    %8 = vector.load %arg2[%c0_4, %c0_5, %c0_6] : memref<9x8x8xbf16, #tpu.memory_space<vmem>>, vector<9x8x8xbf16>
    %9 = tpu.iota {dimensions = array<i32: 1>} : vector<1x256xi32>
    %c16_i32 = arith.constant 16 : i32
    %c0_i32 = arith.constant 0 : i32
    %10 = arith.cmpi eq, %c16_i32, %c0_i32 : i32
    %c1_i32 = arith.constant 1 : i32
    %11 = arith.select %10, %c1_i32, %c16_i32 : i32
    %12 = vector.broadcast %11 : i32 to vector<1x256xi32>
    %13 = arith.remsi %9, %12 : vector<1x256xi32>
    %c0_i32_7 = arith.constant 0 : i32
    %14 = vector.broadcast %c0_i32_7 : i32 to vector<1x256xi32>
    %15 = arith.cmpi ne, %13, %14 : vector<1x256xi32>
    %c0_i32_8 = arith.constant 0 : i32
    %16 = vector.broadcast %c0_i32_8 : i32 to vector<1x256xi32>
    %17 = arith.cmpi slt, %13, %16 : vector<1x256xi32>
    %c0_i32_9 = arith.constant 0 : i32
    %18 = arith.cmpi slt, %11, %c0_i32_9 : i32
    %19 = vector.broadcast %18 : i1 to vector<1x256xi1>
    %20 = vector.broadcast %19 : vector<1x256xi1> to vector<1x256xi1>
    %21 = arith.xori %17, %20 : vector<1x256xi1>
    %22 = arith.andi %21, %15 : vector<1x256xi1>
    %23 = vector.broadcast %11 : i32 to vector<1x256xi32>
    %24 = arith.addi %13, %23 : vector<1x256xi32>
    %25 = arith.select %22, %24, %13 : vector<1x256xi1>, vector<1x256xi32>
    %c1_i32_10 = arith.constant 1 : i32
    %26 = vector.broadcast %c1_i32_10 : i32 to vector<1x256xi32>
    %27 = arith.cmpi sge, %25, %26 : vector<1x256xi32>
    %c14_i32 = arith.constant 14 : i32
    %28 = vector.broadcast %c14_i32 : i32 to vector<1x256xi32>
    %29 = arith.cmpi sle, %25, %28 : vector<1x256xi32>
    %cst = arith.constant 1.000000e+00 : f32
    %30 = vector.broadcast %cst : f32 to vector<256x1xf32>
    %cst_11 = arith.constant 0.000000e+00 : f32
    %31 = vector.broadcast %cst_11 : f32 to vector<16x1xf32>
    %c0_12 = arith.constant 0 : index
    %c0_13 = arith.constant 0 : index
    %c0_14 = arith.constant 0 : index
    %32 = vector.load %arg0[%c0_12, %c0_13, %c0_14] : memref<2x4x256xf32, #tpu.memory_space<vmem>>, vector<1x4x256xf32>
    %33 = vector.shape_cast %32 : vector<1x4x256xf32> to vector<4x256xf32>
    %cst_15 = arith.constant 0.000000e+00 : f32
    %34 = vector.broadcast %cst_15 : f32 to vector<4x17xf32>
    %35 = vector.extract_strided_slice %33 {offsets = [0, 0], sizes = [4, 239], strides = [1, 1]} : vector<4x256xf32> to vector<4x239xf32>
    %36 = tpu.concatenate %34, %35 in 1 : vector<4x17xf32>, vector<4x239xf32> -> vector<4x256xf32>
    %cst_16 = arith.constant 0.000000e+00 : f32
    %37 = vector.shape_cast %27 : vector<1x256xi1> to vector<1x256xi1>
    %38 = vector.broadcast %37 : vector<1x256xi1> to vector<4x256xi1>
    %39 = vector.broadcast %cst_16 : f32 to vector<4x256xf32>
    %40 = arith.select %38, %36, %39 : vector<4x256xi1>, vector<4x256xf32>
    %41 = vector.extract_strided_slice %7 {offsets = [0, 0, 0], sizes = [1, 8, 4], strides = [1, 1, 1]} : vector<9x8x4xbf16> to vector<1x8x4xbf16>
    %42 = vector.shape_cast %41 : vector<1x8x4xbf16> to vector<8x4xbf16>
    %43 = arith.truncf %40 : vector<4x256xf32> to vector<4x256xbf16>
    %cst_17 = arith.constant dense<0.000000e+00> : vector<8x256xf32>
    %44 = tpu.matmul %42, %43, %cst_17 {dimension_numbers = #tpu.dot_dimension_numbers<[1], [0], [0], [1], [0, 0, 1, 1], [], []>} : vector<8x4xbf16>, vector<4x256xbf16>, vector<8x256xf32> -> vector<8x256xf32>
    %cst_18 = arith.constant 0.000000e+00 : f32
    %45 = vector.broadcast %cst_18 : f32 to vector<4x16xf32>
    %46 = vector.extract_strided_slice %33 {offsets = [0, 0], sizes = [4, 240], strides = [1, 1]} : vector<4x256xf32> to vector<4x240xf32>
    %47 = tpu.concatenate %45, %46 in 1 : vector<4x16xf32>, vector<4x240xf32> -> vector<4x256xf32>
    %48 = vector.extract_strided_slice %7 {offsets = [1, 0, 0], sizes = [1, 8, 4], strides = [1, 1, 1]} : vector<9x8x4xbf16> to vector<1x8x4xbf16>
    %49 = vector.shape_cast %48 : vector<1x8x4xbf16> to vector<8x4xbf16>
    %50 = arith.truncf %47 : vector<4x256xf32> to vector<4x256xbf16>
    %cst_19 = arith.constant dense<0.000000e+00> : vector<8x256xf32>
    %51 = tpu.matmul %49, %50, %cst_19 {dimension_numbers = #tpu.dot_dimension_numbers<[1], [0], [0], [1], [0, 0, 1, 1], [], []>} : vector<8x4xbf16>, vector<4x256xbf16>, vector<8x256xf32> -> vector<8x256xf32>
    %52 = arith.addf %44, %51 : vector<8x256xf32>
    %cst_20 = arith.constant 0.000000e+00 : f32
    %53 = vector.broadcast %cst_20 : f32 to vector<4x15xf32>
    %54 = vector.extract_strided_slice %33 {offsets = [0, 0], sizes = [4, 241], strides = [1, 1]} : vector<4x256xf32> to vector<4x241xf32>
    %55 = tpu.concatenate %53, %54 in 1 : vector<4x15xf32>, vector<4x241xf32> -> vector<4x256xf32>
    %cst_21 = arith.constant 0.000000e+00 : f32
    %56 = vector.shape_cast %29 : vector<1x256xi1> to vector<1x256xi1>
    %57 = vector.broadcast %56 : vector<1x256xi1> to vector<4x256xi1>
    %58 = vector.broadcast %cst_21 : f32 to vector<4x256xf32>
    %59 = arith.select %57, %55, %58 : vector<4x256xi1>, vector<4x256xf32>
    %60 = vector.extract_strided_slice %7 {offsets = [2, 0, 0], sizes = [1, 8, 4], strides = [1, 1, 1]} : vector<9x8x4xbf16> to vector<1x8x4xbf16>
    %61 = vector.shape_cast %60 : vector<1x8x4xbf16> to vector<8x4xbf16>
    %62 = arith.truncf %59 : vector<4x256xf32> to vector<4x256xbf16>
    %cst_22 = arith.constant dense<0.000000e+00> : vector<8x256xf32>
    %63 = tpu.matmul %61, %62, %cst_22 {dimension_numbers = #tpu.dot_dimension_numbers<[1], [0], [0], [1], [0, 0, 1, 1], [], []>} : vector<8x4xbf16>, vector<4x256xbf16>, vector<8x256xf32> -> vector<8x256xf32>
    %64 = arith.addf %52, %63 : vector<8x256xf32>
    %cst_23 = arith.constant 0.000000e+00 : f32
    %65 = vector.broadcast %cst_23 : f32 to vector<4x1xf32>
    %66 = vector.extract_strided_slice %33 {offsets = [0, 0], sizes = [4, 255], strides = [1, 1]} : vector<4x256xf32> to vector<4x255xf32>
    %67 = tpu.concatenate %65, %66 in 1 : vector<4x1xf32>, vector<4x255xf32> -> vector<4x256xf32>
    %cst_24 = arith.constant 0.000000e+00 : f32
    %68 = vector.shape_cast %27 : vector<1x256xi1> to vector<1x256xi1>
    %69 = vector.broadcast %68 : vector<1x256xi1> to vector<4x256xi1>
    %70 = vector.broadcast %cst_24 : f32 to vector<4x256xf32>
    %71 = arith.select %69, %67, %70 : vector<4x256xi1>, vector<4x256xf32>
    %72 = vector.extract_strided_slice %7 {offsets = [3, 0, 0], sizes = [1, 8, 4], strides = [1, 1, 1]} : vector<9x8x4xbf16> to vector<1x8x4xbf16>
    %73 = vector.shape_cast %72 : vector<1x8x4xbf16> to vector<8x4xbf16>
    %74 = arith.truncf %71 : vector<4x256xf32> to vector<4x256xbf16>
    %cst_25 = arith.constant dense<0.000000e+00> : vector<8x256xf32>
    %75 = tpu.matmul %73, %74, %cst_25 {dimension_numbers = #tpu.dot_dimension_numbers<[1], [0], [0], [1], [0, 0, 1, 1], [], []>} : vector<8x4xbf16>, vector<4x256xbf16>, vector<8x256xf32> -> vector<8x256xf32>
    %76 = arith.addf %64, %75 : vector<8x256xf32>
    %77 = vector.extract_strided_slice %7 {offsets = [4, 0, 0], sizes = [1, 8, 4], strides = [1, 1, 1]} : vector<9x8x4xbf16> to vector<1x8x4xbf16>
    %78 = vector.shape_cast %77 : vector<1x8x4xbf16> to vector<8x4xbf16>
    %79 = arith.truncf %33 : vector<4x256xf32> to vector<4x256xbf16>
    %cst_26 = arith.constant dense<0.000000e+00> : vector<8x256xf32>
    %80 = tpu.matmul %78, %79, %cst_26 {dimension_numbers = #tpu.dot_dimension_numbers<[1], [0], [0], [1], [0, 0, 1, 1], [], []>} : vector<8x4xbf16>, vector<4x256xbf16>, vector<8x256xf32> -> vector<8x256xf32>
    %81 = arith.addf %76, %80 : vector<8x256xf32>
    %cst_27 = arith.constant 0.000000e+00 : f32
    %82 = vector.broadcast %cst_27 : f32 to vector<4x1xf32>
    %83 = vector.extract_strided_slice %33 {offsets = [0, 1], sizes = [4, 255], strides = [1, 1]} : vector<4x256xf32> to vector<4x255xf32>
    %84 = tpu.concatenate %83, %82 in 1 : vector<4x255xf32>, vector<4x1xf32> -> vector<4x256xf32>
    %cst_28 = arith.constant 0.000000e+00 : f32
    %85 = vector.shape_cast %29 : vector<1x256xi1> to vector<1x256xi1>
    %86 = vector.broadcast %85 : vector<1x256xi1> to vector<4x256xi1>
    %87 = vector.broadcast %cst_28 : f32 to vector<4x256xf32>
    %88 = arith.select %86, %84, %87 : vector<4x256xi1>, vector<4x256xf32>
    %89 = vector.extract_strided_slice %7 {offsets = [5, 0, 0], sizes = [1, 8, 4], strides = [1, 1, 1]} : vector<9x8x4xbf16> to vector<1x8x4xbf16>
    %90 = vector.shape_cast %89 : vector<1x8x4xbf16> to vector<8x4xbf16>
    %91 = arith.truncf %88 : vector<4x256xf32> to vector<4x256xbf16>
    %cst_29 = arith.constant dense<0.000000e+00> : vector<8x256xf32>
    %92 = tpu.matmul %90, %91, %cst_29 {dimension_numbers = #tpu.dot_dimension_numbers<[1], [0], [0], [1], [0, 0, 1, 1], [], []>} : vector<8x4xbf16>, vector<4x256xbf16>, vector<8x256xf32> -> vector<8x256xf32>
    %93 = arith.addf %81, %92 : vector<8x256xf32>
    %cst_30 = arith.constant 0.000000e+00 : f32
    %94 = vector.broadcast %cst_30 : f32 to vector<4x15xf32>
    %95 = vector.extract_strided_slice %33 {offsets = [0, 15], sizes = [4, 241], strides = [1, 1]} : vector<4x256xf32> to vector<4x241xf32>
    %96 = tpu.concatenate %95, %94 in 1 : vector<4x241xf32>, vector<4x15xf32> -> vector<4x256xf32>
    %cst_31 = arith.constant 0.000000e+00 : f32
    %97 = vector.shape_cast %27 : vector<1x256xi1> to vector<1x256xi1>
    %98 = vector.broadcast %97 : vector<1x256xi1> to vector<4x256xi1>
    %99 = vector.broadcast %cst_31 : f32 to vector<4x256xf32>
    %100 = arith.select %98, %96, %99 : vector<4x256xi1>, vector<4x256xf32>
    %101 = vector.extract_strided_slice %7 {offsets = [6, 0, 0], sizes = [1, 8, 4], strides = [1, 1, 1]} : vector<9x8x4xbf16> to vector<1x8x4xbf16>
    %102 = vector.shape_cast %101 : vector<1x8x4xbf16> to vector<8x4xbf16>
    %103 = arith.truncf %100 : vector<4x256xf32> to vector<4x256xbf16>
    %cst_32 = arith.constant dense<0.000000e+00> : vector<8x256xf32>
    %104 = tpu.matmul %102, %103, %cst_32 {dimension_numbers = #tpu.dot_dimension_numbers<[1], [0], [0], [1], [0, 0, 1, 1], [], []>} : vector<8x4xbf16>, vector<4x256xbf16>, vector<8x256xf32> -> vector<8x256xf32>
    %105 = arith.addf %93, %104 : vector<8x256xf32>
    %cst_33 = arith.constant 0.000000e+00 : f32
    %106 = vector.broadcast %cst_33 : f32 to vector<4x16xf32>
    %107 = vector.extract_strided_slice %33 {offsets = [0, 16], sizes = [4, 240], strides = [1, 1]} : vector<4x256xf32> to vector<4x240xf32>
    %108 = tpu.concatenate %107, %106 in 1 : vector<4x240xf32>, vector<4x16xf32> -> vector<4x256xf32>
    %109 = vector.extract_strided_slice %7 {offsets = [7, 0, 0], sizes = [1, 8, 4], strides = [1, 1, 1]} : vector<9x8x4xbf16> to vector<1x8x4xbf16>
    %110 = vector.shape_cast %109 : vector<1x8x4xbf16> to vector<8x4xbf16>
    %111 = arith.truncf %108 : vector<4x256xf32> to vector<4x256xbf16>
    %cst_34 = arith.constant dense<0.000000e+00> : vector<8x256xf32>
    %112 = tpu.matmul %110, %111, %cst_34 {dimension_numbers = #tpu.dot_dimension_numbers<[1], [0], [0], [1], [0, 0, 1, 1], [], []>} : vector<8x4xbf16>, vector<4x256xbf16>, vector<8x256xf32> -> vector<8x256xf32>
    %113 = arith.addf %105, %112 : vector<8x256xf32>
    %cst_35 = arith.constant 0.000000e+00 : f32
    %114 = vector.broadcast %cst_35 : f32 to vector<4x17xf32>
    %115 = vector.extract_strided_slice %33 {offsets = [0, 17], sizes = [4, 239], strides = [1, 1]} : vector<4x256xf32> to vector<4x239xf32>
    %116 = tpu.concatenate %115, %114 in 1 : vector<4x239xf32>, vector<4x17xf32> -> vector<4x256xf32>
    %cst_36 = arith.constant 0.000000e+00 : f32
    %117 = vector.shape_cast %29 : vector<1x256xi1> to vector<1x256xi1>
    %118 = vector.broadcast %117 : vector<1x256xi1> to vector<4x256xi1>
    %119 = vector.broadcast %cst_36 : f32 to vector<4x256xf32>
    %120 = arith.select %118, %116, %119 : vector<4x256xi1>, vector<4x256xf32>
    %121 = vector.extract_strided_slice %7 {offsets = [8, 0, 0], sizes = [1, 8, 4], strides = [1, 1, 1]} : vector<9x8x4xbf16> to vector<1x8x4xbf16>
    %122 = vector.shape_cast %121 : vector<1x8x4xbf16> to vector<8x4xbf16>
    %123 = arith.truncf %120 : vector<4x256xf32> to vector<4x256xbf16>
    %cst_37 = arith.constant dense<0.000000e+00> : vector<8x256xf32>
    %124 = tpu.matmul %122, %123, %cst_37 {dimension_numbers = #tpu.dot_dimension_numbers<[1], [0], [0], [1], [0, 0, 1, 1], [], []>} : vector<8x4xbf16>, vector<4x256xbf16>, vector<8x256xf32> -> vector<8x256xf32>
    %125 = arith.addf %113, %124 : vector<8x256xf32>
    %126 = vector.broadcast %1 : vector<8x1xf32> to vector<8x256xf32>
    %127 = arith.addf %125, %126 : vector<8x256xf32>
    %cst_38 = arith.constant 0.000000e+00 : f32
    %128 = vector.broadcast %cst_38 : f32 to vector<8x256xf32>
    %129 = arith.maximumf %127, %128 : vector<8x256xf32>
    %130 = arith.mulf %129, %129 : vector<8x256xf32>
    %131 = tpu.concatenate %129, %130 in 0 : vector<8x256xf32>, vector<8x256xf32> -> vector<16x256xf32>
    %cst_39 = arith.constant dense<0.000000e+00> : vector<16x1xf32>
    %132 = tpu.matmul %131, %30, %cst_39 {dimension_numbers = #tpu.dot_dimension_numbers<[1], [0], [0], [1], [0, 0, 1, 1], [], []>} : vector<16x256xf32>, vector<256x1xf32>, vector<16x1xf32> -> vector<16x1xf32>
    %133 = arith.addf %31, %132 : vector<16x1xf32>
    %c1 = arith.constant 1 : index
    %c0_40 = arith.constant 0 : index
    %c0_41 = arith.constant 0 : index
    %134 = vector.load %arg0[%c1, %c0_40, %c0_41] : memref<2x4x256xf32, #tpu.memory_space<vmem>>, vector<1x4x256xf32>
    %135 = vector.shape_cast %134 : vector<1x4x256xf32> to vector<4x256xf32>
    %cst_42 = arith.constant 0.000000e+00 : f32
    %136 = vector.broadcast %cst_42 : f32 to vector<4x17xf32>
    %137 = vector.extract_strided_slice %135 {offsets = [0, 0], sizes = [4, 239], strides = [1, 1]} : vector<4x256xf32> to vector<4x239xf32>
    %138 = tpu.concatenate %136, %137 in 1 : vector<4x17xf32>, vector<4x239xf32> -> vector<4x256xf32>
    %cst_43 = arith.constant 0.000000e+00 : f32
    %139 = vector.shape_cast %27 : vector<1x256xi1> to vector<1x256xi1>
    %140 = vector.broadcast %139 : vector<1x256xi1> to vector<4x256xi1>
    %141 = vector.broadcast %cst_43 : f32 to vector<4x256xf32>
    %142 = arith.select %140, %138, %141 : vector<4x256xi1>, vector<4x256xf32>
    %143 = vector.extract_strided_slice %7 {offsets = [0, 0, 0], sizes = [1, 8, 4], strides = [1, 1, 1]} : vector<9x8x4xbf16> to vector<1x8x4xbf16>
    %144 = vector.shape_cast %143 : vector<1x8x4xbf16> to vector<8x4xbf16>
    %145 = arith.truncf %142 : vector<4x256xf32> to vector<4x256xbf16>
    %cst_44 = arith.constant dense<0.000000e+00> : vector<8x256xf32>
    %146 = tpu.matmul %144, %145, %cst_44 {dimension_numbers = #tpu.dot_dimension_numbers<[1], [0], [0], [1], [0, 0, 1, 1], [], []>} : vector<8x4xbf16>, vector<4x256xbf16>, vector<8x256xf32> -> vector<8x256xf32>
    %cst_45 = arith.constant 0.000000e+00 : f32
    %147 = vector.broadcast %cst_45 : f32 to vector<4x16xf32>
    %148 = vector.extract_strided_slice %135 {offsets = [0, 0], sizes = [4, 240], strides = [1, 1]} : vector<4x256xf32> to vector<4x240xf32>
    %149 = tpu.concatenate %147, %148 in 1 : vector<4x16xf32>, vector<4x240xf32> -> vector<4x256xf32>
    %150 = vector.extract_strided_slice %7 {offsets = [1, 0, 0], sizes = [1, 8, 4], strides = [1, 1, 1]} : vector<9x8x4xbf16> to vector<1x8x4xbf16>
    %151 = vector.shape_cast %150 : vector<1x8x4xbf16> to vector<8x4xbf16>
    %152 = arith.truncf %149 : vector<4x256xf32> to vector<4x256xbf16>
    %cst_46 = arith.constant dense<0.000000e+00> : vector<8x256xf32>
    %153 = tpu.matmul %151, %152, %cst_46 {dimension_numbers = #tpu.dot_dimension_numbers<[1], [0], [0], [1], [0, 0, 1, 1], [], []>} : vector<8x4xbf16>, vector<4x256xbf16>, vector<8x256xf32> -> vector<8x256xf32>
    %154 = arith.addf %146, %153 : vector<8x256xf32>
    %cst_47 = arith.constant 0.000000e+00 : f32
    %155 = vector.broadcast %cst_47 : f32 to vector<4x15xf32>
    %156 = vector.extract_strided_slice %135 {offsets = [0, 0], sizes = [4, 241], strides = [1, 1]} : vector<4x256xf32> to vector<4x241xf32>
    %157 = tpu.concatenate %155, %156 in 1 : vector<4x15xf32>, vector<4x241xf32> -> vector<4x256xf32>
    %cst_48 = arith.constant 0.000000e+00 : f32
    %158 = vector.shape_cast %29 : vector<1x256xi1> to vector<1x256xi1>
    %159 = vector.broadcast %158 : vector<1x256xi1> to vector<4x256xi1>
    %160 = vector.broadcast %cst_48 : f32 to vector<4x256xf32>
    %161 = arith.select %159, %157, %160 : vector<4x256xi1>, vector<4x256xf32>
    %162 = vector.extract_strided_slice %7 {offsets = [2, 0, 0], sizes = [1, 8, 4], strides = [1, 1, 1]} : vector<9x8x4xbf16> to vector<1x8x4xbf16>
    %163 = vector.shape_cast %162 : vector<1x8x4xbf16> to vector<8x4xbf16>
    %164 = arith.truncf %161 : vector<4x256xf32> to vector<4x256xbf16>
    %cst_49 = arith.constant dense<0.000000e+00> : vector<8x256xf32>
    %165 = tpu.matmul %163, %164, %cst_49 {dimension_numbers = #tpu.dot_dimension_numbers<[1], [0], [0], [1], [0, 0, 1, 1], [], []>} : vector<8x4xbf16>, vector<4x256xbf16>, vector<8x256xf32> -> vector<8x256xf32>
    %166 = arith.addf %154, %165 : vector<8x256xf32>
    %cst_50 = arith.constant 0.000000e+00 : f32
    %167 = vector.broadcast %cst_50 : f32 to vector<4x1xf32>
    %168 = vector.extract_strided_slice %135 {offsets = [0, 0], sizes = [4, 255], strides = [1, 1]} : vector<4x256xf32> to vector<4x255xf32>
    %169 = tpu.concatenate %167, %168 in 1 : vector<4x1xf32>, vector<4x255xf32> -> vector<4x256xf32>
    %cst_51 = arith.constant 0.000000e+00 : f32
    %170 = vector.shape_cast %27 : vector<1x256xi1> to vector<1x256xi1>
    %171 = vector.broadcast %170 : vector<1x256xi1> to vector<4x256xi1>
    %172 = vector.broadcast %cst_51 : f32 to vector<4x256xf32>
    %173 = arith.select %171, %169, %172 : vector<4x256xi1>, vector<4x256xf32>
    %174 = vector.extract_strided_slice %7 {offsets = [3, 0, 0], sizes = [1, 8, 4], strides = [1, 1, 1]} : vector<9x8x4xbf16> to vector<1x8x4xbf16>
    %175 = vector.shape_cast %174 : vector<1x8x4xbf16> to vector<8x4xbf16>
    %176 = arith.truncf %173 : vector<4x256xf32> to vector<4x256xbf16>
    %cst_52 = arith.constant dense<0.000000e+00> : vector<8x256xf32>
    %177 = tpu.matmul %175, %176, %cst_52 {dimension_numbers = #tpu.dot_dimension_numbers<[1], [0], [0], [1], [0, 0, 1, 1], [], []>} : vector<8x4xbf16>, vector<4x256xbf16>, vector<8x256xf32> -> vector<8x256xf32>
    %178 = arith.addf %166, %177 : vector<8x256xf32>
    %179 = vector.extract_strided_slice %7 {offsets = [4, 0, 0], sizes = [1, 8, 4], strides = [1, 1, 1]} : vector<9x8x4xbf16> to vector<1x8x4xbf16>
    %180 = vector.shape_cast %179 : vector<1x8x4xbf16> to vector<8x4xbf16>
    %181 = arith.truncf %135 : vector<4x256xf32> to vector<4x256xbf16>
    %cst_53 = arith.constant dense<0.000000e+00> : vector<8x256xf32>
    %182 = tpu.matmul %180, %181, %cst_53 {dimension_numbers = #tpu.dot_dimension_numbers<[1], [0], [0], [1], [0, 0, 1, 1], [], []>} : vector<8x4xbf16>, vector<4x256xbf16>, vector<8x256xf32> -> vector<8x256xf32>
    %183 = arith.addf %178, %182 : vector<8x256xf32>
    %cst_54 = arith.constant 0.000000e+00 : f32
    %184 = vector.broadcast %cst_54 : f32 to vector<4x1xf32>
    %185 = vector.extract_strided_slice %135 {offsets = [0, 1], sizes = [4, 255], strides = [1, 1]} : vector<4x256xf32> to vector<4x255xf32>
    %186 = tpu.concatenate %185, %184 in 1 : vector<4x255xf32>, vector<4x1xf32> -> vector<4x256xf32>
    %cst_55 = arith.constant 0.000000e+00 : f32
    %187 = vector.shape_cast %29 : vector<1x256xi1> to vector<1x256xi1>
    %188 = vector.broadcast %187 : vector<1x256xi1> to vector<4x256xi1>
    %189 = vector.broadcast %cst_55 : f32 to vector<4x256xf32>
    %190 = arith.select %188, %186, %189 : vector<4x256xi1>, vector<4x256xf32>
    %191 = vector.extract_strided_slice %7 {offsets = [5, 0, 0], sizes = [1, 8, 4], strides = [1, 1, 1]} : vector<9x8x4xbf16> to vector<1x8x4xbf16>
    %192 = vector.shape_cast %191 : vector<1x8x4xbf16> to vector<8x4xbf16>
    %193 = arith.truncf %190 : vector<4x256xf32> to vector<4x256xbf16>
    %cst_56 = arith.constant dense<0.000000e+00> : vector<8x256xf32>
    %194 = tpu.matmul %192, %193, %cst_56 {dimension_numbers = #tpu.dot_dimension_numbers<[1], [0], [0], [1], [0, 0, 1, 1], [], []>} : vector<8x4xbf16>, vector<4x256xbf16>, vector<8x256xf32> -> vector<8x256xf32>
    %195 = arith.addf %183, %194 : vector<8x256xf32>
    %cst_57 = arith.constant 0.000000e+00 : f32
    %196 = vector.broadcast %cst_57 : f32 to vector<4x15xf32>
    %197 = vector.extract_strided_slice %135 {offsets = [0, 15], sizes = [4, 241], strides = [1, 1]} : vector<4x256xf32> to vector<4x241xf32>
    %198 = tpu.concatenate %197, %196 in 1 : vector<4x241xf32>, vector<4x15xf32> -> vector<4x256xf32>
    %cst_58 = arith.constant 0.000000e+00 : f32
    %199 = vector.shape_cast %27 : vector<1x256xi1> to vector<1x256xi1>
    %200 = vector.broadcast %199 : vector<1x256xi1> to vector<4x256xi1>
    %201 = vector.broadcast %cst_58 : f32 to vector<4x256xf32>
    %202 = arith.select %200, %198, %201 : vector<4x256xi1>, vector<4x256xf32>
    %203 = vector.extract_strided_slice %7 {offsets = [6, 0, 0], sizes = [1, 8, 4], strides = [1, 1, 1]} : vector<9x8x4xbf16> to vector<1x8x4xbf16>
    %204 = vector.shape_cast %203 : vector<1x8x4xbf16> to vector<8x4xbf16>
    %205 = arith.truncf %202 : vector<4x256xf32> to vector<4x256xbf16>
    %cst_59 = arith.constant dense<0.000000e+00> : vector<8x256xf32>
    %206 = tpu.matmul %204, %205, %cst_59 {dimension_numbers = #tpu.dot_dimension_numbers<[1], [0], [0], [1], [0, 0, 1, 1], [], []>} : vector<8x4xbf16>, vector<4x256xbf16>, vector<8x256xf32> -> vector<8x256xf32>
    %207 = arith.addf %195, %206 : vector<8x256xf32>
    %cst_60 = arith.constant 0.000000e+00 : f32
    %208 = vector.broadcast %cst_60 : f32 to vector<4x16xf32>
    %209 = vector.extract_strided_slice %135 {offsets = [0, 16], sizes = [4, 240], strides = [1, 1]} : vector<4x256xf32> to vector<4x240xf32>
    %210 = tpu.concatenate %209, %208 in 1 : vector<4x240xf32>, vector<4x16xf32> -> vector<4x256xf32>
    %211 = vector.extract_strided_slice %7 {offsets = [7, 0, 0], sizes = [1, 8, 4], strides = [1, 1, 1]} : vector<9x8x4xbf16> to vector<1x8x4xbf16>
    %212 = vector.shape_cast %211 : vector<1x8x4xbf16> to vector<8x4xbf16>
    %213 = arith.truncf %210 : vector<4x256xf32> to vector<4x256xbf16>
    %cst_61 = arith.constant dense<0.000000e+00> : vector<8x256xf32>
    %214 = tpu.matmul %212, %213, %cst_61 {dimension_numbers = #tpu.dot_dimension_numbers<[1], [0], [0], [1], [0, 0, 1, 1], [], []>} : vector<8x4xbf16>, vector<4x256xbf16>, vector<8x256xf32> -> vector<8x256xf32>
    %215 = arith.addf %207, %214 : vector<8x256xf32>
    %cst_62 = arith.constant 0.000000e+00 : f32
    %216 = vector.broadcast %cst_62 : f32 to vector<4x17xf32>
    %217 = vector.extract_strided_slice %135 {offsets = [0, 17], sizes = [4, 239], strides = [1, 1]} : vector<4x256xf32> to vector<4x239xf32>
    %218 = tpu.concatenate %217, %216 in 1 : vector<4x239xf32>, vector<4x17xf32> -> vector<4x256xf32>
    %cst_63 = arith.constant 0.000000e+00 : f32
    %219 = vector.shape_cast %29 : vector<1x256xi1> to vector<1x256xi1>
    %220 = vector.broadcast %219 : vector<1x256xi1> to vector<4x256xi1>
    %221 = vector.broadcast %cst_63 : f32 to vector<4x256xf32>
    %222 = arith.select %220, %218, %221 : vector<4x256xi1>, vector<4x256xf32>
    %223 = vector.extract_strided_slice %7 {offsets = [8, 0, 0], sizes = [1, 8, 4], strides = [1, 1, 1]} : vector<9x8x4xbf16> to vector<1x8x4xbf16>
    %224 = vector.shape_cast %223 : vector<1x8x4xbf16> to vector<8x4xbf16>
    %225 = arith.truncf %222 : vector<4x256xf32> to vector<4x256xbf16>
    %cst_64 = arith.constant dense<0.000000e+00> : vector<8x256xf32>
    %226 = tpu.matmul %224, %225, %cst_64 {dimension_numbers = #tpu.dot_dimension_numbers<[1], [0], [0], [1], [0, 0, 1, 1], [], []>} : vector<8x4xbf16>, vector<4x256xbf16>, vector<8x256xf32> -> vector<8x256xf32>
    %227 = arith.addf %215, %226 : vector<8x256xf32>
    %228 = vector.broadcast %1 : vector<8x1xf32> to vector<8x256xf32>
    %229 = arith.addf %227, %228 : vector<8x256xf32>
    %cst_65 = arith.constant 0.000000e+00 : f32
    %230 = vector.broadcast %cst_65 : f32 to vector<8x256xf32>
    %231 = arith.maximumf %229, %230 : vector<8x256xf32>
    %232 = arith.mulf %231, %231 : vector<8x256xf32>
    %233 = tpu.concatenate %231, %232 in 0 : vector<8x256xf32>, vector<8x256xf32> -> vector<16x256xf32>
    %cst_66 = arith.constant dense<0.000000e+00> : vector<16x1xf32>
    %234 = tpu.matmul %233, %30, %cst_66 {dimension_numbers = #tpu.dot_dimension_numbers<[1], [0], [0], [1], [0, 0, 1, 1], [], []>} : vector<16x256xf32>, vector<256x1xf32>, vector<16x1xf32> -> vector<16x1xf32>
    %235 = arith.addf %133, %234 : vector<16x1xf32>
    %236 = vector.extract_strided_slice %235 {offsets = [0, 0], sizes = [8, 1], strides = [1, 1]} : vector<16x1xf32> to vector<8x1xf32>
    %cst_67 = arith.constant 0.001953125 : f32
    %237 = vector.broadcast %cst_67 : f32 to vector<8x1xf32>
    %238 = arith.mulf %236, %237 : vector<8x1xf32>
    %239 = vector.extract_strided_slice %235 {offsets = [8, 0], sizes = [8, 1], strides = [1, 1]} : vector<16x1xf32> to vector<8x1xf32>
    %cst_68 = arith.constant 0.001953125 : f32
    %240 = vector.broadcast %cst_68 : f32 to vector<8x1xf32>
    %241 = arith.mulf %239, %240 : vector<8x1xf32>
    %242 = arith.mulf %238, %238 : vector<8x1xf32>
    %243 = arith.subf %241, %242 : vector<8x1xf32>
    %cst_69 = arith.constant 0.000000e+00 : f32
    %244 = vector.broadcast %cst_69 : f32 to vector<8x1xf32>
    %245 = arith.maximumf %243, %244 : vector<8x1xf32>
    %cst_70 = arith.constant 9.99999974E-6 : f32
    %246 = vector.broadcast %cst_70 : f32 to vector<8x1xf32>
    %247 = arith.addf %245, %246 : vector<8x1xf32>
    %248 = math.rsqrt %247 : vector<8x1xf32>
    %249 = arith.mulf %2, %248 : vector<8x1xf32>
    %250 = arith.mulf %238, %249 : vector<8x1xf32>
    %251 = arith.subf %3, %250 : vector<8x1xf32>
    %cst_71 = arith.constant 0.000000e+00 : f32
    %252 = vector.broadcast %cst_71 : f32 to vector<16x1xf32>
    %253 = vector.broadcast %249 : vector<8x1xf32> to vector<8x256xf32>
    %254 = arith.mulf %129, %253 : vector<8x256xf32>
    %255 = vector.broadcast %251 : vector<8x1xf32> to vector<8x256xf32>
    %256 = arith.addf %254, %255 : vector<8x256xf32>
    %cst_72 = arith.constant 0.000000e+00 : f32
    %257 = vector.broadcast %cst_72 : f32 to vector<8x17xf32>
    %258 = vector.extract_strided_slice %256 {offsets = [0, 0], sizes = [8, 239], strides = [1, 1]} : vector<8x256xf32> to vector<8x239xf32>
    %259 = tpu.concatenate %257, %258 in 1 : vector<8x17xf32>, vector<8x239xf32> -> vector<8x256xf32>
    %cst_73 = arith.constant 0.000000e+00 : f32
    %260 = vector.shape_cast %27 : vector<1x256xi1> to vector<1x256xi1>
    %261 = vector.broadcast %260 : vector<1x256xi1> to vector<8x256xi1>
    %262 = vector.broadcast %cst_73 : f32 to vector<8x256xf32>
    %263 = arith.select %261, %259, %262 : vector<8x256xi1>, vector<8x256xf32>
    %264 = vector.extract_strided_slice %8 {offsets = [0, 0, 0], sizes = [1, 8, 8], strides = [1, 1, 1]} : vector<9x8x8xbf16> to vector<1x8x8xbf16>
    %265 = vector.shape_cast %264 : vector<1x8x8xbf16> to vector<8x8xbf16>
    %266 = arith.truncf %263 : vector<8x256xf32> to vector<8x256xbf16>
    %cst_74 = arith.constant dense<0.000000e+00> : vector<8x256xf32>
    %267 = tpu.matmul %265, %266, %cst_74 {dimension_numbers = #tpu.dot_dimension_numbers<[1], [0], [0], [1], [0, 0, 1, 1], [], []>} : vector<8x8xbf16>, vector<8x256xbf16>, vector<8x256xf32> -> vector<8x256xf32>
    %cst_75 = arith.constant 0.000000e+00 : f32
    %268 = vector.broadcast %cst_75 : f32 to vector<8x16xf32>
    %269 = vector.extract_strided_slice %256 {offsets = [0, 0], sizes = [8, 240], strides = [1, 1]} : vector<8x256xf32> to vector<8x240xf32>
    %270 = tpu.concatenate %268, %269 in 1 : vector<8x16xf32>, vector<8x240xf32> -> vector<8x256xf32>
    %271 = vector.extract_strided_slice %8 {offsets = [1, 0, 0], sizes = [1, 8, 8], strides = [1, 1, 1]} : vector<9x8x8xbf16> to vector<1x8x8xbf16>
    %272 = vector.shape_cast %271 : vector<1x8x8xbf16> to vector<8x8xbf16>
    %273 = arith.truncf %270 : vector<8x256xf32> to vector<8x256xbf16>
    %cst_76 = arith.constant dense<0.000000e+00> : vector<8x256xf32>
    %274 = tpu.matmul %272, %273, %cst_76 {dimension_numbers = #tpu.dot_dimension_numbers<[1], [0], [0], [1], [0, 0, 1, 1], [], []>} : vector<8x8xbf16>, vector<8x256xbf16>, vector<8x256xf32> -> vector<8x256xf32>
    %275 = arith.addf %267, %274 : vector<8x256xf32>
    %cst_77 = arith.constant 0.000000e+00 : f32
    %276 = vector.broadcast %cst_77 : f32 to vector<8x15xf32>
    %277 = vector.extract_strided_slice %256 {offsets = [0, 0], sizes = [8, 241], strides = [1, 1]} : vector<8x256xf32> to vector<8x241xf32>
    %278 = tpu.concatenate %276, %277 in 1 : vector<8x15xf32>, vector<8x241xf32> -> vector<8x256xf32>
    %cst_78 = arith.constant 0.000000e+00 : f32
    %279 = vector.shape_cast %29 : vector<1x256xi1> to vector<1x256xi1>
    %280 = vector.broadcast %279 : vector<1x256xi1> to vector<8x256xi1>
    %281 = vector.broadcast %cst_78 : f32 to vector<8x256xf32>
    %282 = arith.select %280, %278, %281 : vector<8x256xi1>, vector<8x256xf32>
    %283 = vector.extract_strided_slice %8 {offsets = [2, 0, 0], sizes = [1, 8, 8], strides = [1, 1, 1]} : vector<9x8x8xbf16> to vector<1x8x8xbf16>
    %284 = vector.shape_cast %283 : vector<1x8x8xbf16> to vector<8x8xbf16>
    %285 = arith.truncf %282 : vector<8x256xf32> to vector<8x256xbf16>
    %cst_79 = arith.constant dense<0.000000e+00> : vector<8x256xf32>
    %286 = tpu.matmul %284, %285, %cst_79 {dimension_numbers = #tpu.dot_dimension_numbers<[1], [0], [0], [1], [0, 0, 1, 1], [], []>} : vector<8x8xbf16>, vector<8x256xbf16>, vector<8x256xf32> -> vector<8x256xf32>
    %287 = arith.addf %275, %286 : vector<8x256xf32>
    %cst_80 = arith.constant 0.000000e+00 : f32
    %288 = vector.broadcast %cst_80 : f32 to vector<8x1xf32>
    %289 = vector.extract_strided_slice %256 {offsets = [0, 0], sizes = [8, 255], strides = [1, 1]} : vector<8x256xf32> to vector<8x255xf32>
    %290 = tpu.concatenate %288, %289 in 1 : vector<8x1xf32>, vector<8x255xf32> -> vector<8x256xf32>
    %cst_81 = arith.constant 0.000000e+00 : f32
    %291 = vector.shape_cast %27 : vector<1x256xi1> to vector<1x256xi1>
    %292 = vector.broadcast %291 : vector<1x256xi1> to vector<8x256xi1>
    %293 = vector.broadcast %cst_81 : f32 to vector<8x256xf32>
    %294 = arith.select %292, %290, %293 : vector<8x256xi1>, vector<8x256xf32>
    %295 = vector.extract_strided_slice %8 {offsets = [3, 0, 0], sizes = [1, 8, 8], strides = [1, 1, 1]} : vector<9x8x8xbf16> to vector<1x8x8xbf16>
    %296 = vector.shape_cast %295 : vector<1x8x8xbf16> to vector<8x8xbf16>
    %297 = arith.truncf %294 : vector<8x256xf32> to vector<8x256xbf16>
    %cst_82 = arith.constant dense<0.000000e+00> : vector<8x256xf32>
    %298 = tpu.matmul %296, %297, %cst_82 {dimension_numbers = #tpu.dot_dimension_numbers<[1], [0], [0], [1], [0, 0, 1, 1], [], []>} : vector<8x8xbf16>, vector<8x256xbf16>, vector<8x256xf32> -> vector<8x256xf32>
    %299 = arith.addf %287, %298 : vector<8x256xf32>
    %300 = vector.extract_strided_slice %8 {offsets = [4, 0, 0], sizes = [1, 8, 8], strides = [1, 1, 1]} : vector<9x8x8xbf16> to vector<1x8x8xbf16>
    %301 = vector.shape_cast %300 : vector<1x8x8xbf16> to vector<8x8xbf16>
    %302 = arith.truncf %256 : vector<8x256xf32> to vector<8x256xbf16>
    %cst_83 = arith.constant dense<0.000000e+00> : vector<8x256xf32>
    %303 = tpu.matmul %301, %302, %cst_83 {dimension_numbers = #tpu.dot_dimension_numbers<[1], [0], [0], [1], [0, 0, 1, 1], [], []>} : vector<8x8xbf16>, vector<8x256xbf16>, vector<8x256xf32> -> vector<8x256xf32>
    %304 = arith.addf %299, %303 : vector<8x256xf32>
    %cst_84 = arith.constant 0.000000e+00 : f32
    %305 = vector.broadcast %cst_84 : f32 to vector<8x1xf32>
    %306 = vector.extract_strided_slice %256 {offsets = [0, 1], sizes = [8, 255], strides = [1, 1]} : vector<8x256xf32> to vector<8x255xf32>
    %307 = tpu.concatenate %306, %305 in 1 : vector<8x255xf32>, vector<8x1xf32> -> vector<8x256xf32>
    %cst_85 = arith.constant 0.000000e+00 : f32
    %308 = vector.shape_cast %29 : vector<1x256xi1> to vector<1x256xi1>
    %309 = vector.broadcast %308 : vector<1x256xi1> to vector<8x256xi1>
    %310 = vector.broadcast %cst_85 : f32 to vector<8x256xf32>
    %311 = arith.select %309, %307, %310 : vector<8x256xi1>, vector<8x256xf32>
    %312 = vector.extract_strided_slice %8 {offsets = [5, 0, 0], sizes = [1, 8, 8], strides = [1, 1, 1]} : vector<9x8x8xbf16> to vector<1x8x8xbf16>
    %313 = vector.shape_cast %312 : vector<1x8x8xbf16> to vector<8x8xbf16>
    %314 = arith.truncf %311 : vector<8x256xf32> to vector<8x256xbf16>
    %cst_86 = arith.constant dense<0.000000e+00> : vector<8x256xf32>
    %315 = tpu.matmul %313, %314, %cst_86 {dimension_numbers = #tpu.dot_dimension_numbers<[1], [0], [0], [1], [0, 0, 1, 1], [], []>} : vector<8x8xbf16>, vector<8x256xbf16>, vector<8x256xf32> -> vector<8x256xf32>
    %316 = arith.addf %304, %315 : vector<8x256xf32>
    %cst_87 = arith.constant 0.000000e+00 : f32
    %317 = vector.broadcast %cst_87 : f32 to vector<8x15xf32>
    %318 = vector.extract_strided_slice %256 {offsets = [0, 15], sizes = [8, 241], strides = [1, 1]} : vector<8x256xf32> to vector<8x241xf32>
    %319 = tpu.concatenate %318, %317 in 1 : vector<8x241xf32>, vector<8x15xf32> -> vector<8x256xf32>
    %cst_88 = arith.constant 0.000000e+00 : f32
    %320 = vector.shape_cast %27 : vector<1x256xi1> to vector<1x256xi1>
    %321 = vector.broadcast %320 : vector<1x256xi1> to vector<8x256xi1>
    %322 = vector.broadcast %cst_88 : f32 to vector<8x256xf32>
    %323 = arith.select %321, %319, %322 : vector<8x256xi1>, vector<8x256xf32>
    %324 = vector.extract_strided_slice %8 {offsets = [6, 0, 0], sizes = [1, 8, 8], strides = [1, 1, 1]} : vector<9x8x8xbf16> to vector<1x8x8xbf16>
    %325 = vector.shape_cast %324 : vector<1x8x8xbf16> to vector<8x8xbf16>
    %326 = arith.truncf %323 : vector<8x256xf32> to vector<8x256xbf16>
    %cst_89 = arith.constant dense<0.000000e+00> : vector<8x256xf32>
    %327 = tpu.matmul %325, %326, %cst_89 {dimension_numbers = #tpu.dot_dimension_numbers<[1], [0], [0], [1], [0, 0, 1, 1], [], []>} : vector<8x8xbf16>, vector<8x256xbf16>, vector<8x256xf32> -> vector<8x256xf32>
    %328 = arith.addf %316, %327 : vector<8x256xf32>
    %cst_90 = arith.constant 0.000000e+00 : f32
    %329 = vector.broadcast %cst_90 : f32 to vector<8x16xf32>
    %330 = vector.extract_strided_slice %256 {offsets = [0, 16], sizes = [8, 240], strides = [1, 1]} : vector<8x256xf32> to vector<8x240xf32>
    %331 = tpu.concatenate %330, %329 in 1 : vector<8x240xf32>, vector<8x16xf32> -> vector<8x256xf32>
    %332 = vector.extract_strided_slice %8 {offsets = [7, 0, 0], sizes = [1, 8, 8], strides = [1, 1, 1]} : vector<9x8x8xbf16> to vector<1x8x8xbf16>
    %333 = vector.shape_cast %332 : vector<1x8x8xbf16> to vector<8x8xbf16>
    %334 = arith.truncf %331 : vector<8x256xf32> to vector<8x256xbf16>
    %cst_91 = arith.constant dense<0.000000e+00> : vector<8x256xf32>
    %335 = tpu.matmul %333, %334, %cst_91 {dimension_numbers = #tpu.dot_dimension_numbers<[1], [0], [0], [1], [0, 0, 1, 1], [], []>} : vector<8x8xbf16>, vector<8x256xbf16>, vector<8x256xf32> -> vector<8x256xf32>
    %336 = arith.addf %328, %335 : vector<8x256xf32>
    %cst_92 = arith.constant 0.000000e+00 : f32
    %337 = vector.broadcast %cst_92 : f32 to vector<8x17xf32>
    %338 = vector.extract_strided_slice %256 {offsets = [0, 17], sizes = [8, 239], strides = [1, 1]} : vector<8x256xf32> to vector<8x239xf32>
    %339 = tpu.concatenate %338, %337 in 1 : vector<8x239xf32>, vector<8x17xf32> -> vector<8x256xf32>
    %cst_93 = arith.constant 0.000000e+00 : f32
    %340 = vector.shape_cast %29 : vector<1x256xi1> to vector<1x256xi1>
    %341 = vector.broadcast %340 : vector<1x256xi1> to vector<8x256xi1>
    %342 = vector.broadcast %cst_93 : f32 to vector<8x256xf32>
    %343 = arith.select %341, %339, %342 : vector<8x256xi1>, vector<8x256xf32>
    %344 = vector.extract_strided_slice %8 {offsets = [8, 0, 0], sizes = [1, 8, 8], strides = [1, 1, 1]} : vector<9x8x8xbf16> to vector<1x8x8xbf16>
    %345 = vector.shape_cast %344 : vector<1x8x8xbf16> to vector<8x8xbf16>
    %346 = arith.truncf %343 : vector<8x256xf32> to vector<8x256xbf16>
    %cst_94 = arith.constant dense<0.000000e+00> : vector<8x256xf32>
    %347 = tpu.matmul %345, %346, %cst_94 {dimension_numbers = #tpu.dot_dimension_numbers<[1], [0], [0], [1], [0, 0, 1, 1], [], []>} : vector<8x8xbf16>, vector<8x256xbf16>, vector<8x256xf32> -> vector<8x256xf32>
    %348 = arith.addf %336, %347 : vector<8x256xf32>
    %349 = vector.broadcast %4 : vector<8x1xf32> to vector<8x256xf32>
    %350 = arith.addf %348, %349 : vector<8x256xf32>
    %cst_95 = arith.constant 0.000000e+00 : f32
    %351 = vector.broadcast %cst_95 : f32 to vector<8x256xf32>
    %352 = arith.maximumf %350, %351 : vector<8x256xf32>
    %353 = arith.mulf %352, %352 : vector<8x256xf32>
    %354 = tpu.concatenate %352, %353 in 0 : vector<8x256xf32>, vector<8x256xf32> -> vector<16x256xf32>
    %cst_96 = arith.constant dense<0.000000e+00> : vector<16x1xf32>
    %355 = tpu.matmul %354, %30, %cst_96 {dimension_numbers = #tpu.dot_dimension_numbers<[1], [0], [0], [1], [0, 0, 1, 1], [], []>} : vector<16x256xf32>, vector<256x1xf32>, vector<16x1xf32> -> vector<16x1xf32>
    %356 = arith.addf %252, %355 : vector<16x1xf32>
    %357 = vector.broadcast %249 : vector<8x1xf32> to vector<8x256xf32>
    %358 = arith.mulf %231, %357 : vector<8x256xf32>
    %359 = vector.broadcast %251 : vector<8x1xf32> to vector<8x256xf32>
    %360 = arith.addf %358, %359 : vector<8x256xf32>
    %cst_97 = arith.constant 0.000000e+00 : f32
    %361 = vector.broadcast %cst_97 : f32 to vector<8x17xf32>
    %362 = vector.extract_strided_slice %360 {offsets = [0, 0], sizes = [8, 239], strides = [1, 1]} : vector<8x256xf32> to vector<8x239xf32>
    %363 = tpu.concatenate %361, %362 in 1 : vector<8x17xf32>, vector<8x239xf32> -> vector<8x256xf32>
    %cst_98 = arith.constant 0.000000e+00 : f32
    %364 = vector.shape_cast %27 : vector<1x256xi1> to vector<1x256xi1>
    %365 = vector.broadcast %364 : vector<1x256xi1> to vector<8x256xi1>
    %366 = vector.broadcast %cst_98 : f32 to vector<8x256xf32>
    %367 = arith.select %365, %363, %366 : vector<8x256xi1>, vector<8x256xf32>
    %368 = vector.extract_strided_slice %8 {offsets = [0, 0, 0], sizes = [1, 8, 8], strides = [1, 1, 1]} : vector<9x8x8xbf16> to vector<1x8x8xbf16>
    %369 = vector.shape_cast %368 : vector<1x8x8xbf16> to vector<8x8xbf16>
    %370 = arith.truncf %367 : vector<8x256xf32> to vector<8x256xbf16>
    %cst_99 = arith.constant dense<0.000000e+00> : vector<8x256xf32>
    %371 = tpu.matmul %369, %370, %cst_99 {dimension_numbers = #tpu.dot_dimension_numbers<[1], [0], [0], [1], [0, 0, 1, 1], [], []>} : vector<8x8xbf16>, vector<8x256xbf16>, vector<8x256xf32> -> vector<8x256xf32>
    %cst_100 = arith.constant 0.000000e+00 : f32
    %372 = vector.broadcast %cst_100 : f32 to vector<8x16xf32>
    %373 = vector.extract_strided_slice %360 {offsets = [0, 0], sizes = [8, 240], strides = [1, 1]} : vector<8x256xf32> to vector<8x240xf32>
    %374 = tpu.concatenate %372, %373 in 1 : vector<8x16xf32>, vector<8x240xf32> -> vector<8x256xf32>
    %375 = vector.extract_strided_slice %8 {offsets = [1, 0, 0], sizes = [1, 8, 8], strides = [1, 1, 1]} : vector<9x8x8xbf16> to vector<1x8x8xbf16>
    %376 = vector.shape_cast %375 : vector<1x8x8xbf16> to vector<8x8xbf16>
    %377 = arith.truncf %374 : vector<8x256xf32> to vector<8x256xbf16>
    %cst_101 = arith.constant dense<0.000000e+00> : vector<8x256xf32>
    %378 = tpu.matmul %376, %377, %cst_101 {dimension_numbers = #tpu.dot_dimension_numbers<[1], [0], [0], [1], [0, 0, 1, 1], [], []>} : vector<8x8xbf16>, vector<8x256xbf16>, vector<8x256xf32> -> vector<8x256xf32>
    %379 = arith.addf %371, %378 : vector<8x256xf32>
    %cst_102 = arith.constant 0.000000e+00 : f32
    %380 = vector.broadcast %cst_102 : f32 to vector<8x15xf32>
    %381 = vector.extract_strided_slice %360 {offsets = [0, 0], sizes = [8, 241], strides = [1, 1]} : vector<8x256xf32> to vector<8x241xf32>
    %382 = tpu.concatenate %380, %381 in 1 : vector<8x15xf32>, vector<8x241xf32> -> vector<8x256xf32>
    %cst_103 = arith.constant 0.000000e+00 : f32
    %383 = vector.shape_cast %29 : vector<1x256xi1> to vector<1x256xi1>
    %384 = vector.broadcast %383 : vector<1x256xi1> to vector<8x256xi1>
    %385 = vector.broadcast %cst_103 : f32 to vector<8x256xf32>
    %386 = arith.select %384, %382, %385 : vector<8x256xi1>, vector<8x256xf32>
    %387 = vector.extract_strided_slice %8 {offsets = [2, 0, 0], sizes = [1, 8, 8], strides = [1, 1, 1]} : vector<9x8x8xbf16> to vector<1x8x8xbf16>
    %388 = vector.shape_cast %387 : vector<1x8x8xbf16> to vector<8x8xbf16>
    %389 = arith.truncf %386 : vector<8x256xf32> to vector<8x256xbf16>
    %cst_104 = arith.constant dense<0.000000e+00> : vector<8x256xf32>
    %390 = tpu.matmul %388, %389, %cst_104 {dimension_numbers = #tpu.dot_dimension_numbers<[1], [0], [0], [1], [0, 0, 1, 1], [], []>} : vector<8x8xbf16>, vector<8x256xbf16>, vector<8x256xf32> -> vector<8x256xf32>
    %391 = arith.addf %379, %390 : vector<8x256xf32>
    %cst_105 = arith.constant 0.000000e+00 : f32
    %392 = vector.broadcast %cst_105 : f32 to vector<8x1xf32>
    %393 = vector.extract_strided_slice %360 {offsets = [0, 0], sizes = [8, 255], strides = [1, 1]} : vector<8x256xf32> to vector<8x255xf32>
    %394 = tpu.concatenate %392, %393 in 1 : vector<8x1xf32>, vector<8x255xf32> -> vector<8x256xf32>
    %cst_106 = arith.constant 0.000000e+00 : f32
    %395 = vector.shape_cast %27 : vector<1x256xi1> to vector<1x256xi1>
    %396 = vector.broadcast %395 : vector<1x256xi1> to vector<8x256xi1>
    %397 = vector.broadcast %cst_106 : f32 to vector<8x256xf32>
    %398 = arith.select %396, %394, %397 : vector<8x256xi1>, vector<8x256xf32>
    %399 = vector.extract_strided_slice %8 {offsets = [3, 0, 0], sizes = [1, 8, 8], strides = [1, 1, 1]} : vector<9x8x8xbf16> to vector<1x8x8xbf16>
    %400 = vector.shape_cast %399 : vector<1x8x8xbf16> to vector<8x8xbf16>
    %401 = arith.truncf %398 : vector<8x256xf32> to vector<8x256xbf16>
    %cst_107 = arith.constant dense<0.000000e+00> : vector<8x256xf32>
    %402 = tpu.matmul %400, %401, %cst_107 {dimension_numbers = #tpu.dot_dimension_numbers<[1], [0], [0], [1], [0, 0, 1, 1], [], []>} : vector<8x8xbf16>, vector<8x256xbf16>, vector<8x256xf32> -> vector<8x256xf32>
    %403 = arith.addf %391, %402 : vector<8x256xf32>
    %404 = vector.extract_strided_slice %8 {offsets = [4, 0, 0], sizes = [1, 8, 8], strides = [1, 1, 1]} : vector<9x8x8xbf16> to vector<1x8x8xbf16>
    %405 = vector.shape_cast %404 : vector<1x8x8xbf16> to vector<8x8xbf16>
    %406 = arith.truncf %360 : vector<8x256xf32> to vector<8x256xbf16>
    %cst_108 = arith.constant dense<0.000000e+00> : vector<8x256xf32>
    %407 = tpu.matmul %405, %406, %cst_108 {dimension_numbers = #tpu.dot_dimension_numbers<[1], [0], [0], [1], [0, 0, 1, 1], [], []>} : vector<8x8xbf16>, vector<8x256xbf16>, vector<8x256xf32> -> vector<8x256xf32>
    %408 = arith.addf %403, %407 : vector<8x256xf32>
    %cst_109 = arith.constant 0.000000e+00 : f32
    %409 = vector.broadcast %cst_109 : f32 to vector<8x1xf32>
    %410 = vector.extract_strided_slice %360 {offsets = [0, 1], sizes = [8, 255], strides = [1, 1]} : vector<8x256xf32> to vector<8x255xf32>
    %411 = tpu.concatenate %410, %409 in 1 : vector<8x255xf32>, vector<8x1xf32> -> vector<8x256xf32>
    %cst_110 = arith.constant 0.000000e+00 : f32
    %412 = vector.shape_cast %29 : vector<1x256xi1> to vector<1x256xi1>
    %413 = vector.broadcast %412 : vector<1x256xi1> to vector<8x256xi1>
    %414 = vector.broadcast %cst_110 : f32 to vector<8x256xf32>
    %415 = arith.select %413, %411, %414 : vector<8x256xi1>, vector<8x256xf32>
    %416 = vector.extract_strided_slice %8 {offsets = [5, 0, 0], sizes = [1, 8, 8], strides = [1, 1, 1]} : vector<9x8x8xbf16> to vector<1x8x8xbf16>
    %417 = vector.shape_cast %416 : vector<1x8x8xbf16> to vector<8x8xbf16>
    %418 = arith.truncf %415 : vector<8x256xf32> to vector<8x256xbf16>
    %cst_111 = arith.constant dense<0.000000e+00> : vector<8x256xf32>
    %419 = tpu.matmul %417, %418, %cst_111 {dimension_numbers = #tpu.dot_dimension_numbers<[1], [0], [0], [1], [0, 0, 1, 1], [], []>} : vector<8x8xbf16>, vector<8x256xbf16>, vector<8x256xf32> -> vector<8x256xf32>
    %420 = arith.addf %408, %419 : vector<8x256xf32>
    %cst_112 = arith.constant 0.000000e+00 : f32
    %421 = vector.broadcast %cst_112 : f32 to vector<8x15xf32>
    %422 = vector.extract_strided_slice %360 {offsets = [0, 15], sizes = [8, 241], strides = [1, 1]} : vector<8x256xf32> to vector<8x241xf32>
    %423 = tpu.concatenate %422, %421 in 1 : vector<8x241xf32>, vector<8x15xf32> -> vector<8x256xf32>
    %cst_113 = arith.constant 0.000000e+00 : f32
    %424 = vector.shape_cast %27 : vector<1x256xi1> to vector<1x256xi1>
    %425 = vector.broadcast %424 : vector<1x256xi1> to vector<8x256xi1>
    %426 = vector.broadcast %cst_113 : f32 to vector<8x256xf32>
    %427 = arith.select %425, %423, %426 : vector<8x256xi1>, vector<8x256xf32>
    %428 = vector.extract_strided_slice %8 {offsets = [6, 0, 0], sizes = [1, 8, 8], strides = [1, 1, 1]} : vector<9x8x8xbf16> to vector<1x8x8xbf16>
    %429 = vector.shape_cast %428 : vector<1x8x8xbf16> to vector<8x8xbf16>
    %430 = arith.truncf %427 : vector<8x256xf32> to vector<8x256xbf16>
    %cst_114 = arith.constant dense<0.000000e+00> : vector<8x256xf32>
    %431 = tpu.matmul %429, %430, %cst_114 {dimension_numbers = #tpu.dot_dimension_numbers<[1], [0], [0], [1], [0, 0, 1, 1], [], []>} : vector<8x8xbf16>, vector<8x256xbf16>, vector<8x256xf32> -> vector<8x256xf32>
    %432 = arith.addf %420, %431 : vector<8x256xf32>
    %cst_115 = arith.constant 0.000000e+00 : f32
    %433 = vector.broadcast %cst_115 : f32 to vector<8x16xf32>
    %434 = vector.extract_strided_slice %360 {offsets = [0, 16], sizes = [8, 240], strides = [1, 1]} : vector<8x256xf32> to vector<8x240xf32>
    %435 = tpu.concatenate %434, %433 in 1 : vector<8x240xf32>, vector<8x16xf32> -> vector<8x256xf32>
    %436 = vector.extract_strided_slice %8 {offsets = [7, 0, 0], sizes = [1, 8, 8], strides = [1, 1, 1]} : vector<9x8x8xbf16> to vector<1x8x8xbf16>
    %437 = vector.shape_cast %436 : vector<1x8x8xbf16> to vector<8x8xbf16>
    %438 = arith.truncf %435 : vector<8x256xf32> to vector<8x256xbf16>
    %cst_116 = arith.constant dense<0.000000e+00> : vector<8x256xf32>
    %439 = tpu.matmul %437, %438, %cst_116 {dimension_numbers = #tpu.dot_dimension_numbers<[1], [0], [0], [1], [0, 0, 1, 1], [], []>} : vector<8x8xbf16>, vector<8x256xbf16>, vector<8x256xf32> -> vector<8x256xf32>
    %440 = arith.addf %432, %439 : vector<8x256xf32>
    %cst_117 = arith.constant 0.000000e+00 : f32
    %441 = vector.broadcast %cst_117 : f32 to vector<8x17xf32>
    %442 = vector.extract_strided_slice %360 {offsets = [0, 17], sizes = [8, 239], strides = [1, 1]} : vector<8x256xf32> to vector<8x239xf32>
    %443 = tpu.concatenate %442, %441 in 1 : vector<8x239xf32>, vector<8x17xf32> -> vector<8x256xf32>
    %cst_118 = arith.constant 0.000000e+00 : f32
    %444 = vector.shape_cast %29 : vector<1x256xi1> to vector<1x256xi1>
    %445 = vector.broadcast %444 : vector<1x256xi1> to vector<8x256xi1>
    %446 = vector.broadcast %cst_118 : f32 to vector<8x256xf32>
    %447 = arith.select %445, %443, %446 : vector<8x256xi1>, vector<8x256xf32>
    %448 = vector.extract_strided_slice %8 {offsets = [8, 0, 0], sizes = [1, 8, 8], strides = [1, 1, 1]} : vector<9x8x8xbf16> to vector<1x8x8xbf16>
    %449 = vector.shape_cast %448 : vector<1x8x8xbf16> to vector<8x8xbf16>
    %450 = arith.truncf %447 : vector<8x256xf32> to vector<8x256xbf16>
    %cst_119 = arith.constant dense<0.000000e+00> : vector<8x256xf32>
    %451 = tpu.matmul %449, %450, %cst_119 {dimension_numbers = #tpu.dot_dimension_numbers<[1], [0], [0], [1], [0, 0, 1, 1], [], []>} : vector<8x8xbf16>, vector<8x256xbf16>, vector<8x256xf32> -> vector<8x256xf32>
    %452 = arith.addf %440, %451 : vector<8x256xf32>
    %453 = vector.broadcast %4 : vector<8x1xf32> to vector<8x256xf32>
    %454 = arith.addf %452, %453 : vector<8x256xf32>
    %cst_120 = arith.constant 0.000000e+00 : f32
    %455 = vector.broadcast %cst_120 : f32 to vector<8x256xf32>
    %456 = arith.maximumf %454, %455 : vector<8x256xf32>
    %457 = arith.mulf %456, %456 : vector<8x256xf32>
    %458 = tpu.concatenate %456, %457 in 0 : vector<8x256xf32>, vector<8x256xf32> -> vector<16x256xf32>
    %cst_121 = arith.constant dense<0.000000e+00> : vector<16x1xf32>
    %459 = tpu.matmul %458, %30, %cst_121 {dimension_numbers = #tpu.dot_dimension_numbers<[1], [0], [0], [1], [0, 0, 1, 1], [], []>} : vector<16x256xf32>, vector<256x1xf32>, vector<16x1xf32> -> vector<16x1xf32>
    %460 = arith.addf %356, %459 : vector<16x1xf32>
    %461 = vector.extract_strided_slice %460 {offsets = [0, 0], sizes = [8, 1], strides = [1, 1]} : vector<16x1xf32> to vector<8x1xf32>
    %cst_122 = arith.constant 0.001953125 : f32
    %462 = vector.broadcast %cst_122 : f32 to vector<8x1xf32>
    %463 = arith.mulf %461, %462 : vector<8x1xf32>
    %464 = vector.extract_strided_slice %460 {offsets = [8, 0], sizes = [8, 1], strides = [1, 1]} : vector<16x1xf32> to vector<8x1xf32>
    %cst_123 = arith.constant 0.001953125 : f32
    %465 = vector.broadcast %cst_123 : f32 to vector<8x1xf32>
    %466 = arith.mulf %464, %465 : vector<8x1xf32>
    %467 = arith.mulf %463, %463 : vector<8x1xf32>
    %468 = arith.subf %466, %467 : vector<8x1xf32>
    %cst_124 = arith.constant 0.000000e+00 : f32
    %469 = vector.broadcast %cst_124 : f32 to vector<8x1xf32>
    %470 = arith.maximumf %468, %469 : vector<8x1xf32>
    %cst_125 = arith.constant 9.99999974E-6 : f32
    %471 = vector.broadcast %cst_125 : f32 to vector<8x1xf32>
    %472 = arith.addf %470, %471 : vector<8x1xf32>
    %473 = math.rsqrt %472 : vector<8x1xf32>
    %474 = arith.mulf %5, %473 : vector<8x1xf32>
    %475 = arith.mulf %463, %474 : vector<8x1xf32>
    %476 = arith.subf %6, %475 : vector<8x1xf32>
    %477 = vector.broadcast %474 : vector<8x1xf32> to vector<8x256xf32>
    %478 = arith.mulf %352, %477 : vector<8x256xf32>
    %479 = vector.broadcast %476 : vector<8x1xf32> to vector<8x256xf32>
    %480 = arith.addf %478, %479 : vector<8x256xf32>
    %c0_126 = arith.constant 0 : index
    %c0_127 = arith.constant 0 : index
    %c0_128 = arith.constant 0 : index
    %481 = vector.load %arg4[%c0_126, %c0_127, %c0_128] : memref<2x8x256xf32, #tpu.memory_space<vmem>>, vector<1x8x256xf32>
    %482 = vector.shape_cast %481 : vector<1x8x256xf32> to vector<8x256xf32>
    %483 = vector.shape_cast %480 : vector<8x256xf32> to vector<1x8x256xf32>
    tpu.vector_store %arg4[%c0_126, %c0_127, %c0_128], %483 {strides = array<i32>} : memref<2x8x256xf32, #tpu.memory_space<vmem>>, vector<1x8x256xf32>,
    %484 = vector.broadcast %474 : vector<8x1xf32> to vector<8x256xf32>
    %485 = arith.mulf %456, %484 : vector<8x256xf32>
    %486 = vector.broadcast %476 : vector<8x1xf32> to vector<8x256xf32>
    %487 = arith.addf %485, %486 : vector<8x256xf32>
    %c1_129 = arith.constant 1 : index
    %c0_130 = arith.constant 0 : index
    %c0_131 = arith.constant 0 : index
    %488 = vector.load %arg4[%c1_129, %c0_130, %c0_131] : memref<2x8x256xf32, #tpu.memory_space<vmem>>, vector<1x8x256xf32>
    %489 = vector.shape_cast %488 : vector<1x8x256xf32> to vector<8x256xf32>
    %490 = vector.shape_cast %487 : vector<8x256xf32> to vector<1x8x256xf32>
    tpu.vector_store %arg4[%c1_129, %c0_130, %c0_131], %490 {strides = array<i32>} : memref<2x8x256xf32, #tpu.memory_space<vmem>>, vector<1x8x256xf32>,
    return
  }
}

</mosaic_0001>

<bundles_post_ra>
// kernel: double_conv_forward.1
= control target key start
LH: loop header
LB: loop body
LE: loop exit
PB: predicated region body
PF: predicated region fallthrough
CT: control target
= control target key end

     0   :  { %v3182_v2 = vmov 0   ;;  %s3183_s17 = smov 16   ;;  %s3184_s18 = smov 15   ;;  %v37_v8 = vlaneseq  ;;  %vm92_vm0 = vcmask 130048   ;;  %vm103_vm1 = vcmask 1041408   ;;  %s3881_s0 = inlined_call_operand.vmem [shape: f32[2,4,256], index: 0, kind: input, shape index: {}]   ;;  %s3882_s3 = inlined_call_operand.vmem [shape: f32[8,6], index: 3, kind: input, shape index: {}]   ;;  %s3883_s1 = inlined_call_operand.vmem [shape: bf16[9,8,4], index: 1, kind: input, shape index: {}]   ;;  %s3884_s2 = inlined_call_operand.vmem [shape: bf16[9,8,8], index: 2, kind: input, shape index: {}]   ;;  %s3885_s4 = inlined_call_operand.vmem [shape: f32[2,8,256], index: 4, kind: output, shape index: {}]  }
   0x1   :  { %v3229_v0 = vld [vmem:[%s3881_s0] sm:$0xff]  ;;  %142 = vmatprep.mubr.bf16.mxu0 %v3182_v2  ;;  %192 = vmatprep.mubr.bf16.mxu1 %v3182_v2  ;;  %s3185_s19 = smov 17   ;;  %s3186_s20 = smov 1   ;;  %v3247_v4 = vld [vmem:[%s3881_s0 + $0x8] sm:$0xff]  ;;  %vm205_vm2 = vcmask 121856   ;;  %vm99_vm5 = vcmask 31744  }
   0x2   :  { %v3233_v1 = vcombine.high %v3229_v0, %v3229_v0  ;;  %3089 = vset.pattern.permute.xlu0 %v3182_v2  ;;  %s3187_s23 = smov 127   ;;  %s3188_s24 = smov 113   ;;  %v3253_v5 = vcombine.high %v3247_v4, %v3247_v4  ;;  %v3270_v7 = vld [vmem:[%s3882_s3] sm:$0xff]  ;;  %v38_v9 = vand.u32 127, %v37_v8  ;;  %vm75_vm6 = vcmask 138240  }
   0x3   :  { %s3189_s25 = smov 112   ;;  %s3190_s26 = smov 111   ;;  %vm274_vm9 = vcmask 7168   ;;  %vm394_vm10 = vcmask 1039360   ;;  %v3304_v41 = vld [vmem:[%s3883_s1 + $0x4] sm:$0xf] }
   0x4   :  { %v3009_v3 = vpack.i.bf16 %v3233_v1, %v3229_v0  ;;  %v3049_v6 = vpack.i.bf16 %v3253_v5, %v3247_v4  ;;  %v39_v10 = vadd.s32 128, %v38_v9  ;;  %v44_v11 = vand.u32 15, %v38_v9  ;;  %v3327_v62 = vld [vmem:[%s3883_s1] sm:$0xf]  ;;  %s3198_s13 = smov 124   ;;  %s3200_s14 = smov 5  }
   0x5   :  { %v337_v40 = vpack.c.bf16 %v3233_v1, %v3233_v1  ;;  %vm459_vm11 = vcmask 924672   ;;  %vm524_vm12 = vcmask 916480   ;;  %vm587_vm13 = vcmask 908288  }
   0x6   :  { %3010 = vrot.lane.b32.xlu0 %v3009_v3, %s3183_s17  ;;  %3020 = vrot.lane.b32.xlu1 %v3009_v3, %s3184_s18  ;;  %v51_v12 = vand.u32 15, %v39_v10  ;;  %vm3273_vm3 = vcmp.le.s32.totalorder %v44_v11, 14  ;;  %vm3285_vm8 = vcmp.ge.s32.totalorder %v44_v11, 1  ;;  %vm1414_vm14 = vcmask 1043456  }
   0x7   :  { %vm1410_vm15 = vcmask 64512  }
   0x8   :  { %vm3277_vm4 = vcmp.le.s32.totalorder %v51_v12, 14  ;;  %vm3281_vm7 = vcmp.ge.s32.totalorder %v51_v12, 1 }
   0xa   :  { %3015 = vrot.lane.b32.xlu0 %v3009_v3, %s3185_s19  ;;  %3025 = vrot.lane.b32.xlu1 %v3009_v3, %s3186_s20 }
   0xe   :  { %3030 = vrot.lane.b32.xlu0 %v3009_v3, %s3187_s23  ;;  %3035 = vrot.lane.b32.xlu1 %v3009_v3, %s3188_s24 }
  0x12   :  { %3040 = vrot.lane.b32.xlu0 %v3009_v3, %s3189_s25  ;;  %3045 = vrot.lane.b32.xlu1 %v3009_v3, %s3190_s26  ;;  %v336_v3 = vpack.c.bf16 %v3229_v0, %v3229_v0 }
  0x16   :  { %3050 = vrot.lane.b32.xlu0 %v3049_v6, %s3183_s17  ;;  %3055 = vrot.lane.b32.xlu1 %v3049_v6, %s3185_s19 }
  0x1a   :  { %3060 = vrot.lane.b32.xlu0 %v3049_v6, %s3184_s18  ;;  %3065 = vrot.lane.b32.xlu1 %v3049_v6, %s3186_s20 }
  0x1e   :  { %3070 = vrot.lane.b32.xlu0 %v3049_v6, %s3187_s23  ;;  %3075 = vrot.lane.b32.xlu1 %v3049_v6, %s3188_s24 }
  0x22   :  { %3080 = vrot.lane.b32.xlu0 %v3049_v6, %s3189_s25  ;;  %3085 = vrot.lane.b32.xlu1 %v3049_v6, %s3190_s26 }
  0x26   :  { %650 = vperm.xlu0 %3089, %v3270_v7  }
  0x78   :  { %v3011_v13 = vpop.permute.xlu0 %3010  ;;  %v3021_v16 = vpop.permute.xlu1 %3020 }
  0x79   :  { %v3013_v17 = vunpack.i.h.bf16 %v3011_v13  ;;  %v3012_v18 = vunpack.i.l.bf16 %v3011_v13  ;;  %v3023_v19 = vunpack.i.h.bf16 %v3021_v16  ;;  %v3022_v20 = vunpack.i.l.bf16 %v3021_v16 }
  0x7b   :  { %v93_v23 = vsel %vm92_vm0, %v3012_v18, %v3013_v17  ;;  %v206_v24 = vsel %vm205_vm2, %v3022_v20, %v3023_v19  ;;  %v209_v25 = vsel %vm205_vm2, 0.0, %v3022_v20  ;;  %v96_v26 = vsel %vm92_vm0, 0.0, %v3012_v18  ;;  %v3350_v18 = vld [vmem:[%s3883_s1 + $0x8] sm:$0xf] }
  0x7c   :  { %v3016_v27 = vpop.permute.xlu0 %3015  ;;  %v98_v28 = vpack.c.bf16 %v93_v23, %v93_v23  ;;  %v214_v29 = vsel %vm3273_vm3, %v209_v25, 0.0  ;;  %v215_v30 = vsel %vm3277_vm4, %v206_v24, 0.0  ;;  %v97_v31 = vpack.c.bf16 %v96_v26, %v96_v26  ;;  %v3026_v32 = vpop.permute.xlu1 %3025 }
  0x7d   :  { %v3018_v33 = vunpack.i.h.bf16 %v3016_v27  ;;  %v3017_v34 = vunpack.i.l.bf16 %v3016_v27  ;;  %v216_v35 = vpack.c.bf16 %v214_v29, %v214_v29  ;;  %v3028_v36 = vunpack.i.h.bf16 %v3026_v32 }
  0x7e   :  { %2699 = vmatprep.subr.msk.bf16.mxu0 %vm103_vm1, %v98_v28  ;;  %v105_v37 = vsel %vm103_vm1, %v97_v31, 0  ;;  %v3027_v38 = vunpack.i.l.bf16 %v3026_v32  ;;  %v217_v39 = vpack.c.bf16 %v215_v30, %v215_v30  ;;  %v342_v23 = vsel %vm103_vm1, %v336_v3, 0  ;;  %v3365_v32 = vld [vmem:[%s3883_s1 + $0xc] sm:$0xf]  ;;  %v3406_v3 = vld [vmem:[%s3883_s1 + $0x18] sm:$0xf] }
  0x7f   :  { %111 = vmatpush1.bf16.msra.mxu0 %v105_v37  ;;  %v76_v42 = vsel %vm75_vm6, %v3017_v34, %v3018_v33  ;;  %v79_v43 = vsel %vm75_vm6, 0.0, %v3017_v34  ;;  %v222_v44 = vsel %vm103_vm1, %v216_v35, 0 }
  0x80   :  { %v85_v45 = vsel %vm3281_vm7, %v76_v42, 0.0  ;;  %v275_v46 = vsel %vm274_vm9, %v3027_v38, %v3028_v36  ;;  %v278_v47 = vsel %vm274_vm9, 0.0, %v3027_v38  ;;  %v84_v48 = vsel %vm3285_vm8, %v79_v43, 0.0  ;;  %2703 = vmatprep.subr.msk.bf16.mxu0 %vm103_vm1, %v217_v39  ;;  %v3031_v49 = vpop.permute.xlu0 %3030  ;;  %v3036_v50 = vpop.permute.xlu1 %3035 }
  0x81   :  { %v87_v51 = vpack.c.bf16 %v85_v45, %v85_v45  ;;  %v279_v52 = vsel %vm3285_vm8, %v278_v47, 0.0  ;;  %v280_v53 = vsel %vm3281_vm7, %v275_v46, 0.0  ;;  %v86_v54 = vpack.c.bf16 %v84_v48, %v84_v48 }
  0x82   :  { %2700 = vmatmul.mubr.msk.bf16.vlgmr.msra.gmra.mrb[0].mxu0 %vm99_vm5, %v3304_v41  ;;  %v281_v55 = vpack.c.bf16 %v279_v52, %v279_v52  ;;  %v282_v56 = vpack.c.bf16 %v280_v53, %v280_v53  ;;  %v3033_v57 = vunpack.i.h.bf16 %v3031_v49  ;;  %v3032_v58 = vunpack.i.l.bf16 %v3031_v49 }
  0x83   :  { %2701 = vmatprep.subr.msk.bf16.mxu1 %vm103_vm1, %v87_v51  ;;  %v155_v59 = vsel %vm103_vm1, %v86_v54, 0  ;;  %228 = vmatpush1.bf16.msra.mxu0 %v222_v44  ;;  %v3038_v60 = vunpack.i.h.bf16 %v3036_v50  ;;  %v3037_v61 = vunpack.i.l.bf16 %v3036_v50  ;;  %v3378_v44 = vld [vmem:[%s3883_s1 + $0x10] sm:$0xf] }
  0x84   :  { %161 = vmatpush1.bf16.msra.mxu1 %v155_v59  ;;  %259 = vmatprep.mubr.bf16.mxu0 %v3182_v2  ;;  %v398_v63 = vsel %vm394_vm10, %v3033_v57, 0.0  ;;  %v395_v1 = vsel %vm394_vm10, %v3032_v58, %v3033_v57  ;;  %v3041_v6 = vpop.permute.xlu0 %3040  ;;  %v3046_v8 = vpop.permute.xlu1 %3045  ;;  %v287_v10 = vsel %vm103_vm1, %v281_v55, 0  ;;  %v3393_v55 = vld [vmem:[%s3883_s1 + $0x14] sm:$0xf] }
  0x85   :  { %2705 = vmatprep.subr.msk.bf16.mxu1 %vm103_vm1, %v282_v56  ;;  %v400_v9 = vsel %vm3277_vm4, %v398_v63, 0.0  ;;  %2707 = vmatprep.subr.msk.bf16.mxu0 %vm103_vm1, %v337_v40  ;;  %v463_v11 = vsel %vm459_vm11, %v3038_v60, 0.0  ;;  %v399_v12 = vsel %vm3273_vm3, %v395_v1, 0.0  ;;  %v460_v16 = vsel %vm459_vm11, %v3037_v61, %v3038_v60 }
  0x86   :  { %v402_v13 = vpack.c.bf16 %v400_v9, %v400_v9  ;;  %v465_v0 = vsel %vm3281_vm7, %v463_v11, 0.0  ;;  %v3043_v17 = vunpack.i.h.bf16 %v3041_v6  ;;  %v3048_v19 = vunpack.i.h.bf16 %v3046_v8 }
  0x87   :  { %2702 = vmatmul.mubr.msk.bf16.vlgmr.msra.gmra.mrb[0].mxu1 %vm99_vm5, %v3327_v62  ;;  %v467_v20 = vpack.c.bf16 %v465_v0, %v465_v0  ;;  %v401_v24 = vpack.c.bf16 %v399_v12, %v399_v12  ;;  %v3042_v25 = vunpack.i.l.bf16 %v3041_v6  ;;  %v3047_v26 = vunpack.i.l.bf16 %v3046_v8 }
  0x88   :  { %293 = vmatpush1.bf16.msra.mxu1 %v287_v10  ;;  %324 = vmatprep.mubr.bf16.mxu1 %v3182_v2  ;;  %v464_v27 = vsel %vm3285_vm8, %v460_v16, 0.0  ;;  %v528_v28 = vsel %vm524_vm12, %v3043_v17, 0.0  ;;  %v591_v29 = vsel %vm587_vm13, %v3048_v19, 0.0  ;;  %v3051_v30 = vpop.permute.xlu0 %3050  ;;  %v3056_v31 = vpop.permute.xlu1 %3055 }
  0x89   :  { %2709 = vmatprep.subr.msk.bf16.mxu1 %vm103_vm1, %v402_v13  ;;  %v407_v33 = vsel %vm103_vm1, %v401_v24, 0  ;;  %v466_v34 = vpack.c.bf16 %v464_v27, %v464_v27  ;;  %v530_v35 = vpack.c.bf16 %v528_v28, %v528_v28  ;;  %v593_v36 = vsel %vm3277_vm4, %v591_v29, 0.0  ;;  %v3438_v28 = vld [vmem:[%s3883_s1 + $0x20] sm:$0xf] }
  0x8a   :  { %2704 = vmatmul.mubr.msk.bf16.vlgmr.msra.gmra.mrb[4].mxu0 %vm99_vm5, %v3350_v18  ;;  %v588_v37 = vsel %vm587_vm13, %v3047_v26, %v3048_v19  ;;  %v525_v38 = vsel %vm524_vm12, %v3042_v25, %v3043_v17  ;;  %v3053_v39 = vunpack.i.h.bf16 %v3051_v30  ;;  %v3052_v40 = vunpack.i.l.bf16 %v3051_v30  ;;  %v3424_v19 = vld [vmem:[%s3883_s1 + $0x1c] sm:$0xf]  ;;  %s3194_s1 = smov 2  }
  0x8b   :  { %348 = vmatpush1.bf16.msra.mxu0 %v342_v23  ;;  %379 = vmatprep.mubr.bf16.mxu0 %v3182_v2  ;;  %v3058_v42 = vunpack.i.h.bf16 %v3056_v31  ;;  %v3057_v43 = vunpack.i.l.bf16 %v3056_v31  ;;  %v595_v45 = vpack.c.bf16 %v593_v36, %v593_v36  ;;  %v472_v46 = vsel %vm103_vm1, %v466_v34, 0 }
  0x8c   :  { %2711 = vmatprep.subr.msk.bf16.mxu0 %vm103_vm1, %v467_v20  ;;  %v3061_v47 = vpop.permute.xlu0 %3060  ;;  %v529_v48 = vpack.c.bf16 %v525_v38, %v525_v38  ;;  %v592_v49 = vsel %vm3273_vm3, %v588_v37, 0.0  ;;  %v679_v50 = vsel %vm92_vm0, %v3052_v40, %v3053_v39  ;;  %v3066_v54 = vpop.permute.xlu1 %3065  ;;  %v682_v60 = vsel %vm92_vm0, 0.0, %v3052_v40 }
  0x8d   :  { %v667_v51 = vsel %vm75_vm6, %v3057_v43, %v3058_v42  ;;  %v3063_v52 = vunpack.i.h.bf16 %v3061_v47  ;;  %v3062_v53 = vunpack.i.l.bf16 %v3061_v47  ;;  %v594_v56 = vpack.c.bf16 %v592_v49, %v592_v49 }
  0x8e   :  { %v535_v57 = vsel %vm103_vm1, %v529_v48, 0  ;;  %v684_v58 = vpack.c.bf16 %v679_v50, %v679_v50  ;;  %v672_v59 = vsel %vm3281_vm7, %v667_v51, 0.0  ;;  %v670_v61 = vsel %vm75_vm6, 0.0, %v3057_v43 }
  0x8f   :  { %2706 = vmatmul.mubr.msk.bf16.vlgmr.msra.gmra.mrb[4].mxu1 %vm99_vm5, %v3365_v32  ;;  %v3068_v63 = vunpack.i.h.bf16 %v3066_v54  ;;  %v3067_v1 = vunpack.i.l.bf16 %v3066_v54  ;;  %v783_v6 = vsel %vm205_vm2, %v3062_v53, %v3063_v52  ;;  %v600_v8 = vsel %vm103_vm1, %v594_v56, 0 }
  0x90   :  { %413 = vmatpush1.bf16.msra.mxu1 %v407_v33  ;;  %444 = vmatprep.mubr.bf16.mxu1 %v3182_v2  ;;  %v674_v9 = vpack.c.bf16 %v672_v59, %v672_v59  ;;  %v683_v10 = vpack.c.bf16 %v682_v60, %v682_v60  ;;  %v671_v11 = vsel %vm3285_vm8, %v670_v61, 0.0  ;;  %v788_v12 = vsel %vm3277_vm4, %v783_v6, 0.0  ;;  %v3071_v16 = vpop.permute.xlu0 %3070  ;;  %v3076_v31 = vpop.permute.xlu1 %3075 }
  0x91   :  { %2713 = vmatprep.subr.msk.bf16.mxu1 %vm103_vm1, %v530_v35  ;;  %v844_v13 = vsel %vm274_vm9, %v3067_v1, %v3068_v63  ;;  %v786_v0 = vsel %vm205_vm2, 0.0, %v3062_v53  ;;  %v673_v17 = vpack.c.bf16 %v671_v11, %v671_v11  ;;  %v790_v24 = vpack.c.bf16 %v788_v12, %v788_v12 }
  0x92   :  { %2708 = vmatmul.mubr.msk.bf16.vlgmr.msra.gmra.mrb[8].mxu0 %vm99_vm5, %v3378_v44  ;;  %v686_v20 = vsel %vm103_vm1, %v683_v10, 0  ;;  %v849_v23 = vsel %vm3281_vm7, %v844_v13, 0.0  ;;  %v787_v25 = vsel %vm3273_vm3, %v786_v0, 0.0  ;;  %v847_v26 = vsel %vm274_vm9, 0.0, %v3067_v1 }
  0x93   :  { %478 = vmatpush1.bf16.msra.mxu0 %v472_v46  ;;  %509 = vmatprep.mubr.bf16.mxu0 %v3182_v2  ;;  %v3073_v27 = vunpack.i.h.bf16 %v3071_v16  ;;  %v733_v29 = vsel %vm103_vm1, %v673_v17, 0  ;;  %v851_v30 = vpack.c.bf16 %v849_v23, %v849_v23  ;;  %v789_v33 = vpack.c.bf16 %v787_v25, %v787_v25 }
  0x94   :  { %2715 = vmatprep.subr.msk.bf16.mxu0 %vm103_vm1, %v595_v45  ;;  %v848_v34 = vsel %vm3285_vm8, %v847_v26, 0.0  ;;  %v3072_v36 = vunpack.i.l.bf16 %v3071_v16  ;;  %v3078_v37 = vunpack.i.h.bf16 %v3076_v31  ;;  %v903_v42 = vpack.c.bf16 %v3253_v5, %v3253_v5  ;;  %v3081_v45 = vpop.permute.xlu0 %3080  ;;  %v3086_v50 = vpop.permute.xlu1 %3085 }
  0x95   :  { %v960_v35 = vsel %vm394_vm10, %v3073_v27, 0.0  ;;  %v850_v38 = vpack.c.bf16 %v848_v34, %v848_v34  ;;  %v792_v39 = vsel %vm103_vm1, %v789_v33, 0  ;;  %v3077_v47 = vunpack.i.l.bf16 %v3076_v31 }
  0x96   :  { %v962_v40 = vsel %vm3277_vm4, %v960_v35, 0.0  ;;  %v957_v43 = vsel %vm394_vm10, %v3072_v36, %v3073_v27  ;;  %v1021_v46 = vsel %vm459_vm11, %v3078_v37, 0.0  ;;  %v902_v5 = vpack.c.bf16 %v3247_v4, %v3247_v4 }
  0x97   :  { %2710 = vmatmul.mubr.msk.bf16.vlgmr.msra.gmra.mrb[8].mxu1 %vm99_vm5, %v3393_v55  ;;  %v964_v48 = vpack.c.bf16 %v962_v40, %v962_v40  ;;  %v853_v49 = vsel %vm103_vm1, %v850_v38, 0  ;;  %v961_v51 = vsel %vm3273_vm3, %v957_v43, 0.0  ;;  %v3083_v52 = vunpack.i.h.bf16 %v3081_v45 }
  0x98   :  { %541 = vmatpush1.bf16.msra.mxu1 %v535_v57  ;;  %572 = vmatprep.mubr.bf16.mxu1 %v3182_v2  ;;  %v1018_v53 = vsel %vm459_vm11, %v3077_v47, %v3078_v37  ;;  %v3088_v54 = vunpack.i.h.bf16 %v3086_v50  ;;  %v963_v56 = vpack.c.bf16 %v961_v51, %v961_v51  ;;  %v905_v57 = vsel %vm103_vm1, %v902_v5, 0 }
  0x99   :  { %2718 = vmatprep.subr.msk.bf16.mxu1 %vm103_vm1, %v684_v58  ;;  %v1082_v58 = vsel %vm524_vm12, %v3083_v52, 0.0  ;;  %v3082_v59 = vunpack.i.l.bf16 %v3081_v45  ;;  %v3087_v61 = vunpack.i.l.bf16 %v3086_v50 }
  0x9a   :  { %2712 = vmatmul.mubr.msk.bf16.vlgmr.msra.gmra.mrb[12].mxu0 %vm99_vm5, %v3406_v3  ;;  %v1141_v60 = vsel %vm587_vm13, %v3088_v54, 0.0  ;;  %v966_v63 = vsel %vm103_vm1, %v963_v56, 0  ;;  %v1084_v1 = vpack.c.bf16 %v1082_v58, %v1082_v58 }
  0x9b   :  { %606 = vmatpush1.bf16.msra.mxu0 %v600_v8  ;;  %637 = vmatprep.mubr.bf16.mxu0 %v3182_v2  ;;  %v1079_v8 = vsel %vm524_vm12, %v3082_v59, %v3083_v52 }
  0x9c   :  { %2720 = vmatprep.subr.msk.bf16.mxu0 %vm103_vm1, %v674_v9  ;;  %v1138_v9 = vsel %vm587_vm13, %v3087_v61, %v3088_v54  ;;  %v1083_v10 = vpack.c.bf16 %v1079_v8, %v1079_v8 }
  0x9d   :  { %v1142_v13 = vsel %vm3273_vm3, %v1138_v9, 0.0 }
  0x9e   :  { %v1144_v0 = vpack.c.bf16 %v1142_v13, %v1142_v13 }
  0x9f   :  { %2714 = vmatmul.mubr.msk.bf16.vlgmr.msra.gmra.mrb[12].mxu1 %vm99_vm5, %v3424_v19 }
  0xa0   :  { %692 = vmatpush1.bf16.msra.mxu1 %v686_v20  ;;  %723 = vmatprep.mubr.bf16.mxu1 %v3182_v2  ;;  %v1147_v16 = vsel %vm103_vm1, %v1144_v0, 0 }
  0xa1   :  { %2722 = vmatprep.subr.msk.bf16.mxu1 %vm103_vm1, %v790_v24 }
  0xa2   :  { %2716 = vmatmul.mubr.msk.bf16.vlgmr.msra.gmra.mrb[16].mxu0 %vm99_vm5, %v3438_v28 }
  0xa3   :  { %739 = vmatpush1.bf16.msra.mxu0 %v733_v29  ;;  %770 = vmatprep.mubr.bf16.mxu0 %v3182_v2 }
  0xa4   :  { %2724 = vmatprep.subr.msk.bf16.mxu0 %vm103_vm1, %v851_v30 }
  0xa7   :  { %2719 = vmatmul.mubr.msk.bf16.vlgmr.msra.gmra.mrb[16].mxu1 %vm99_vm5, %v3304_v41  ;;  %v1023_v41 = vsel %vm3281_vm7, %v1021_v46, 0.0 }
  0xa8   :  { %798 = vmatpush1.bf16.msra.mxu1 %v792_v39  ;;  %829 = vmatprep.mubr.bf16.mxu1 %v3182_v2  ;;  %v1025_v4 = vpack.c.bf16 %v1023_v41, %v1023_v41 }
  0xa9   :  { %2726 = vmatprep.subr.msk.bf16.mxu1 %vm103_vm1, %v903_v42 }
  0xaa   :  { %2721 = vmatmul.mubr.msk.bf16.vlgmr.msra.gmra.mrb[20].mxu0 %vm99_vm5, %v3327_v62  ;;  %v1022_v62 = vsel %vm3285_vm8, %v1018_v53, 0.0 }
  0xab   :  { %859 = vmatpush1.bf16.msra.mxu0 %v853_v49  ;;  %890 = vmatprep.mubr.bf16.mxu0 %v3182_v2  ;;  %v1024_v6 = vpack.c.bf16 %v1022_v62, %v1022_v62 }
  0xac   :  { %2728 = vmatprep.subr.msk.bf16.mxu0 %vm103_vm1, %v964_v48 }
  0xad   :  { %v1027_v12 = vsel %vm103_vm1, %v1024_v6, 0 }
  0xaf   :  { %2723 = vmatmul.mubr.msk.bf16.vlgmr.msra.gmra.mrb[20].mxu1 %vm99_vm5, %v3350_v18  ;;  %v1143_v18 = vsel %vm3277_vm4, %v1141_v60, 0.0 }
  0xb0   :  { %911 = vmatpush1.bf16.msra.mxu1 %v905_v57  ;;  %942 = vmatprep.mubr.bf16.mxu1 %v3182_v2  ;;  %v1145_v11 = vpack.c.bf16 %v1143_v18, %v1143_v18 }
  0xb1   :  { %2730 = vmatprep.subr.msk.bf16.mxu1 %vm103_vm1, %v1025_v4 }
  0xb2   :  { %2725 = vmatmul.mubr.msk.bf16.vlgmr.msra.gmra.mrb[24].mxu0 %vm99_vm5, %v3365_v32  ;;  %v1086_v32 = vsel %vm103_vm1, %v1083_v10, 0 }
  0xb3   :  { %972 = vmatpush1.bf16.msra.mxu0 %v966_v63  ;;  %1003 = vmatprep.mubr.bf16.mxu0 %v3182_v2 }
  0xb4   :  { %2732 = vmatprep.subr.msk.bf16.mxu0 %vm103_vm1, %v1084_v1  ;;  %v3542_v1 = vpop.permute.xlu0 %650 }
  0xb7   :  { %2727 = vmatmul.mubr.msk.bf16.vlgmr.msra.gmra.mrb[24].mxu1 %vm99_vm5, %v3378_v44  ;;  %v3191_v44 = vmov 1.0|1.0  }
  0xb8   :  { %1033 = vmatpush1.bf16.msra.mxu1 %v1027_v12  ;;  %1064 = vmatprep.mubr.bf16.mxu1 %v3182_v2 }
  0xb9   :  { %2734 = vmatprep.subr.msk.bf16.mxu1 %vm103_vm1, %v1145_v11 }
  0xba   :  { %2729 = vmatmul.mubr.msk.bf16.vlgmr.msra.gmra.mrb[28].mxu0 %vm99_vm5, %v3393_v55 }
  0xbb   :  { %1092 = vmatpush1.bf16.msra.mxu0 %v1086_v32  ;;  %1123 = vmatprep.mubr.bf16.mxu0 %v3182_v2 }
  0xbc   :  { %2926 = vmatprep.subr.bf16.mxu0 %v3191_v44 }
  0xbf   :  { %2731 = vmatmul.mubr.msk.bf16.vlgmr.msra.gmra.mrb[28].mxu1 %vm99_vm5, %v3406_v3 }
  0xc0   :  { %1153 = vmatpush1.bf16.msra.mxu1 %v1147_v16  ;;  %1184 = vmatprep.mubr.bf16.mxu1 %v3182_v2 }
  0xc1   :  { %2942 = vmatprep.subr.bf16.mxu1 %v3191_v44 }
  0xc2   :  { %2733 = vmatmul.mubr.msk.bf16.vlgmr.msra.gmra.mrb[32].mxu0 %vm99_vm5, %v3424_v19 }
  0xc3   :  { %2927 = vmatpush3.bf16.msra.mxu0 %v3191_v44 }
  0xc4   :  { %2928 = vmatprep.subr.bf16.mxu0 %v3191_v44 }
  0xc7   :  { %2735 = vmatmul.mubr.msk.bf16.vlgmr.msra.gmra.mrb[32].mxu1 %vm99_vm5, %v3438_v28  ;;  %2929 = vmatpush3.bf16.msra.mxu0 %v3191_v44 }
  0xc8   :  { %2943 = vmatpush3.bf16.msra.mxu1 %v3191_v44  ;;  %2930 = vmatprep.subr.bf16.mxu0 %v3191_v44 }
  0xc9   :  { %2944 = vmatprep.subr.bf16.mxu1 %v3191_v44 }
  0xcb   :  { %2931 = vmatpush3.bf16.msra.mxu0 %v3191_v44 }
  0xcc   :  { %2945 = vmatpush3.bf16.msra.mxu1 %v3191_v44  ;;  %2932 = vmatprep.subr.bf16.mxu0 %v3191_v44 }
  0xcd   :  { %2946 = vmatprep.subr.bf16.mxu1 %v3191_v44 }
  0xcf   :  { %2933 = vmatpush3.bf16.msra.mxu0 %v3191_v44 }
  0xd0   :  { %2947 = vmatpush3.bf16.msra.mxu1 %v3191_v44  ;;  %2934 = vmatprep.subr.bf16.mxu0 %v3191_v44 }
  0xd1   :  { %2948 = vmatprep.subr.bf16.mxu1 %v3191_v44 }
  0xd3   :  { %2935 = vmatpush3.bf16.msra.mxu0 %v3191_v44 }
  0xd4   :  { %2949 = vmatpush3.bf16.msra.mxu1 %v3191_v44  ;;  %2936 = vmatprep.subr.bf16.mxu0 %v3191_v44 }
  0xd5   :  { %2950 = vmatprep.subr.bf16.mxu1 %v3191_v44 }
  0xd7   :  { %2937 = vmatpush3.bf16.msra.mxu0 %v3191_v44 }
  0xd8   :  { %2951 = vmatpush3.bf16.msra.mxu1 %v3191_v44  ;;  %2938 = vmatprep.subr.bf16.mxu0 %v3191_v44 }
  0xd9   :  { %2952 = vmatprep.subr.bf16.mxu1 %v3191_v44 }
  0xdb   :  { %2939 = vmatpush3.bf16.msra.mxu0 %v3191_v44 }
  0xdc   :  { %2953 = vmatpush3.bf16.msra.mxu1 %v3191_v44  ;;  %2940 = vmatprep.subr.bf16.mxu0 %v3191_v44 }
  0xdd   :  { %2954 = vmatprep.subr.bf16.mxu1 %v3191_v44 }
  0xdf   :  { %2941 = vmatpush3.bf16.msra.mxu0 %v3191_v44 }
  0xe0   :  { %2955 = vmatpush3.bf16.msra.mxu1 %v3191_v44 }
  0xe1   :  { %2956 = vmatprep.subr.bf16.mxu1 %v3191_v44 }
  0xe4   :  { %2957 = vmatpush3.bf16.msra.mxu1 %v3191_v44 }
 0x155   :  { %v144_v55 = vpop.f32.mrb[0].mxu0 }
 0x156   :  { %v146_v3 = vpop.f32.mrb[1].mxu0 }
 0x157   :  { %v148_v17 = vpop.f32.mrb[2].mxu0 }
 0x158   :  { %v149_v19 = vpop.f32.mrb[3].mxu0 }
 0x15a   :  { %v194_v20 = vpop.f32.mrb[0].mxu1 }
 0x15b   :  { %v195_v23 = vadd.f32 %v194_v20, %v144_v55  ;;  %v196_v24 = vpop.f32.mrb[1].mxu1 }
 0x15c   :  { %v197_v25 = vadd.f32 %v196_v24, %v146_v3  ;;  %v198_v26 = vpop.f32.mrb[2].mxu1 }
 0x15d   :  { %v199_v27 = vpop.f32.mrb[3].mxu1  ;;  %v261_v28 = vpop.f32.mrb[4].mxu0 }
 0x15e   :  { %v268_v29 = vadd.f32 %v261_v28, %v195_v23  ;;  %v263_v30 = vpop.f32.mrb[5].mxu0 }
 0x15f   :  { %v269_v31 = vadd.f32 %v263_v30, %v197_v25  ;;  %v265_v33 = vpop.f32.mrb[6].mxu0 }
 0x160   :  { %v266_v34 = vpop.f32.mrb[7].mxu0 }
 0x162   :  { %v326_v35 = vpop.f32.mrb[4].mxu1 }
 0x163   :  { %v333_v36 = vadd.f32 %v326_v35, %v268_v29  ;;  %v328_v37 = vpop.f32.mrb[5].mxu1 }
 0x164   :  { %v334_v38 = vadd.f32 %v328_v37, %v269_v31  ;;  %v330_v39 = vpop.f32.mrb[6].mxu1 }
 0x165   :  { %v331_v40 = vpop.f32.mrb[7].mxu1  ;;  %v381_v42 = vpop.f32.mrb[8].mxu0 }
 0x166   :  { %v388_v43 = vadd.f32 %v381_v42, %v333_v36  ;;  %v383_v45 = vpop.f32.mrb[9].mxu0 }
 0x167   :  { %v389_v46 = vadd.f32 %v383_v45, %v334_v38  ;;  %v385_v47 = vpop.f32.mrb[10].mxu0 }
 0x168   :  { %v386_v48 = vpop.f32.mrb[11].mxu0 }
 0x16a   :  { %v446_v49 = vpop.f32.mrb[8].mxu1 }
 0x16b   :  { %v453_v50 = vadd.f32 %v446_v49, %v388_v43  ;;  %v448_v5 = vpop.f32.mrb[9].mxu1 }
 0x16c   :  { %v454_v51 = vadd.f32 %v448_v5, %v389_v46  ;;  %v450_v52 = vpop.f32.mrb[10].mxu1 }
 0x16d   :  { %v451_v41 = vpop.f32.mrb[11].mxu1  ;;  %v511_v53 = vpop.f32.mrb[12].mxu0 }
 0x16e   :  { %v518_v54 = vadd.f32 %v511_v53, %v453_v50  ;;  %v513_v56 = vpop.f32.mrb[13].mxu0 }
 0x16f   :  { %v519_v4 = vadd.f32 %v513_v56, %v454_v51  ;;  %v515_v57 = vpop.f32.mrb[14].mxu0 }
 0x170   :  { %v516_v58 = vpop.f32.mrb[15].mxu0 }
 0x172   :  { %v574_v59 = vpop.f32.mrb[12].mxu1 }
 0x173   :  { %v581_v62 = vadd.f32 %v574_v59, %v518_v54  ;;  %v576_v60 = vpop.f32.mrb[13].mxu1 }
 0x174   :  { %v582_v61 = vadd.f32 %v576_v60, %v519_v4  ;;  %v578_v63 = vpop.f32.mrb[14].mxu1 }
 0x175   :  { %v579_v6 = vpop.f32.mrb[15].mxu1  ;;  %v639_v8 = vpop.f32.mrb[16].mxu0 }
 0x176   :  { %v646_v18 = vadd.f32 %v639_v8, %v581_v62  ;;  %v641_v9 = vpop.f32.mrb[17].mxu0 }
 0x177   :  { %v647_v10 = vadd.f32 %v641_v9, %v582_v61  ;;  %v643_v11 = vpop.f32.mrb[18].mxu0 }
 0x178   :  { %v653_v12 = vadd.f32 %v3542_v1, %v646_v18  ;;  %v644_v13 = vpop.f32.mrb[19].mxu0 }
 0x179   :  { %v654_v32 = vadd.f32 %v3542_v1, %v647_v10 }
 0x17a   :  { %v725_v0 = vpop.f32.mrb[16].mxu1  ;;  %v3548_v3 = vmax.f32 %v653_v12, 0.0 }
 0x17b   :  { %v727_v16 = vpop.f32.mrb[17].mxu1  ;;  %v3546_v55 = vmax.f32 %v654_v32, 0.0 }
 0x17c   :  { %v729_v17 = vpop.f32.mrb[18].mxu1  ;;  %v657_v29 = vmul.f32 %v3548_v3, %v3548_v3 }
 0x17d   :  { %v730_v19 = vpop.f32.mrb[19].mxu1  ;;  %v772_v20 = vpop.f32.mrb[20].mxu0  ;;  %1340 = vmatprep.mubr.f32.mxu1 %v3546_v55  ;;  %v658_v23 = vmul.f32 %v3546_v55, %v3546_v55 }
 0x17e   :  { %v773_v24 = vadd.f32 %v772_v20, %v725_v0  ;;  %v774_v25 = vpop.f32.mrb[21].mxu0  ;;  %1341 = vmatmul.mubr.f32.vlgmr.msra.gmra.mrb[36].mxu1 %v3548_v3 }
 0x17f   :  { %v775_v26 = vadd.f32 %v774_v25, %v727_v16  ;;  %v776_v27 = vpop.f32.mrb[22].mxu0  ;;  %1345 = vmatprep.mubr.f32.mxu1 %v658_v23 }
 0x180   :  { %v777_v28 = vpop.f32.mrb[23].mxu0 }
 0x182   :  { %v831_v30 = vpop.f32.mrb[20].mxu1  ;;  %1346 = vmatmul.mubr.f32.gmra.mrb[38].mxu1 %v657_v29 }
 0x183   :  { %v838_v31 = vadd.f32 %v831_v30, %v773_v24  ;;  %v833_v33 = vpop.f32.mrb[21].mxu1  ;;  %1503 = vmatprep.mubr.bf16.mxu1 %v3182_v2 }
 0x184   :  { %v839_v34 = vadd.f32 %v833_v33, %v775_v26  ;;  %v835_v35 = vpop.f32.mrb[22].mxu1 }
 0x185   :  { %v836_v36 = vpop.f32.mrb[23].mxu1  ;;  %v892_v37 = vpop.f32.mrb[24].mxu0 }
 0x186   :  { %v899_v38 = vadd.f32 %v892_v37, %v838_v31  ;;  %v894_v39 = vpop.f32.mrb[25].mxu0 }
 0x187   :  { %v900_v40 = vadd.f32 %v894_v39, %v839_v34  ;;  %v896_v42 = vpop.f32.mrb[26].mxu0 }
 0x188   :  { %v897_v43 = vpop.f32.mrb[27].mxu0 }
 0x18a   :  { %v944_v45 = vpop.f32.mrb[24].mxu1 }
 0x18b   :  { %v951_v46 = vadd.f32 %v944_v45, %v899_v38  ;;  %v946_v47 = vpop.f32.mrb[25].mxu1 }
 0x18c   :  { %v952_v48 = vadd.f32 %v946_v47, %v900_v40  ;;  %v948_v49 = vpop.f32.mrb[26].mxu1 }
 0x18d   :  { %v949_v50 = vpop.f32.mrb[27].mxu1  ;;  %v1005_v5 = vpop.f32.mrb[28].mxu0 }
 0x18e   :  { %v1012_v51 = vadd.f32 %v1005_v5, %v951_v46  ;;  %v1007_v52 = vpop.f32.mrb[29].mxu0  ;;  %v3192_v46 = vmov 1   ;;  %v3193_v50 = vmov 2  }
 0x18f   :  { %v1013_v41 = vadd.f32 %v1007_v52, %v952_v48  ;;  %v1009_v53 = vpop.f32.mrb[30].mxu0  ;;  %3090 = vset.pattern.permute.xlu1 %v3192_v46  ;;  %3091 = vset.pattern.permute.xlu0 %v3193_v50 }
 0x190   :  { %v1010_v54 = vpop.f32.mrb[31].mxu0 }
 0x192   :  { %v1066_v56 = vpop.f32.mrb[28].mxu1 }
 0x193   :  { %v1073_v4 = vadd.f32 %v1066_v56, %v1012_v51  ;;  %v1068_v57 = vpop.f32.mrb[29].mxu1 }
 0x194   :  { %v1074_v58 = vadd.f32 %v1068_v57, %v1013_v41  ;;  %v1070_v59 = vpop.f32.mrb[30].mxu1 }
 0x195   :  { %v1071_v62 = vpop.f32.mrb[31].mxu1  ;;  %v1125_v60 = vpop.f32.mrb[32].mxu0 }
 0x196   :  { %v1132_v61 = vadd.f32 %v1125_v60, %v1073_v4  ;;  %v1127_v63 = vpop.f32.mrb[33].mxu0 }
 0x197   :  { %v1133_v6 = vadd.f32 %v1127_v63, %v1074_v58  ;;  %v1129_v8 = vpop.f32.mrb[34].mxu0  ;;  %v3195_v63 = vmov 3  }
 0x198   :  { %v1130_v18 = vpop.f32.mrb[35].mxu0 }
 0x19a   :  { %v1186_v9 = vpop.f32.mrb[32].mxu1 }
 0x19b   :  { %v1193_v10 = vadd.f32 %v1186_v9, %v1132_v61  ;;  %v1188_v11 = vpop.f32.mrb[33].mxu1 }
 0x19c   :  { %v1194_v12 = vadd.f32 %v1188_v11, %v1133_v6  ;;  %v1190_v13 = vpop.f32.mrb[34].mxu1 }
 0x19d   :  { %v1195_v32 = vadd.f32 %v1193_v10, %v3542_v1  ;;  %v1191_v0 = vpop.f32.mrb[35].mxu1 }
 0x19e   :  { %v1196_v16 = vadd.f32 %v1194_v12, %v3542_v1 }
 0x19f   :  { %v1197_v19 = vmax.f32 %v1195_v32, 0.0 }
 0x1a0   :  { %v1198_v17 = vmax.f32 %v1196_v16, 0.0 }
 0x1a1   :  { %v1199_v23 = vmul.f32 %v1197_v19, %v1197_v19 }
 0x1a2   :  { %1265 = vmatprep.mubr.f32.mxu0 %v1198_v17  ;;  %v1200_v20 = vmul.f32 %v1198_v17, %v1198_v17 }
 0x1a3   :  { %1266 = vmatmul.mubr.f32.vlgmr.msra.gmra.mrb[36].mxu0 %v1197_v19 }
 0x1a4   :  { %1270 = vmatprep.mubr.f32.mxu0 %v1200_v20 }
 0x1a7   :  { %1271 = vmatmul.mubr.f32.gmra.mrb[38].mxu0 %v1199_v23 }
 0x1a8   :  { %1453 = vmatprep.mubr.bf16.mxu0 %v3182_v2 }
 0x251   :  { %v2844_v24 = vpop.f32.mrb[36].mxu1 }
 0x252   :  { %v2845_v25 = vpop.f32.mrb[37].mxu1 }
 0x253   :  { %v2846_v26 = vadd.f32 %v2845_v25, %v2844_v24 }
 0x255   :  { %v2847_v27 = vpop.f32.mrb[38].mxu1 }
 0x256   :  { %v2848_v28 = vpop.f32.mrb[39].mxu1 }
 0x257   :  { %v2849_v29 = vadd.f32 %v2848_v28, %v2847_v27 }
 0x276   :  { %v2806_v30 = vpop.f32.mrb[36].mxu0 }
 0x277   :  { %v2807_v31 = vpop.f32.mrb[37].mxu0 }
 0x278   :  { %v2808_v33 = vadd.f32 %v2807_v31, %v2806_v30 }
 0x27a   :  { %v1343_v1 = vadd.f32 %v2846_v26, %v2808_v33  ;;  %v2809_v34 = vpop.f32.mrb[38].mxu0 }
 0x27b   :  { %v2810_v35 = vpop.f32.mrb[39].mxu0 }
 0x27c   :  { %v1351_v36 = vmul.f32 0.001953125, %v1343_v1  ;;  %v2811_v37 = vadd.f32 %v2810_v35, %v2809_v34 }
 0x27e   :  { %v1348_v38 = vadd.f32 %v2849_v29, %v2811_v37  ;;  %v1353_v39 = vmul.f32 %v1351_v36, %v1351_v36  ;;  %v3608_v29 = vld [vmem:[%s3884_s2 + $0x4] sm:$0xf] }
 0x280   :  { %v1352_v40 = vmul.f32 0.001953125, %v1348_v38 }
 0x282   :  { %v1354_v42 = vsub.f32 %v1352_v40, %v1353_v39 }
 0x284   :  { %v1355_v43 = vmax.f32 %v1354_v42, 0.0 }
 0x286   :  { %v1356_v45 = vadd.f32 1e-05, %v1355_v43 }
 0x288   :  { %3177 = vrsqrt.f32 %v1356_v45 }
 0x292   :  { %v3178_v47 = vpop.eup %3177 }
 0x293   :  { %1359 = vrot.lane.b32.xlu1 %v3178_v47, %s3186_s20 }
 0x305   :  { %v1360_v48 = vpop.permute.xlu1 %1359 }
 0x306   :  { %v1362_v49 = vmul.f32 %v1360_v48, %v3270_v7 }
 0x308   :  { %1364 = vrot.lane.b32.xlu1 %v1362_v49, %s3187_s23 }
 0x30c   :  { %1374 = vperm.xlu1 %3090, %v1362_v49  }
 0x37a   :  { %v1365_v5 = vpop.permute.xlu1 %1364 }
 0x37b   :  { %v1367_v51 = vmul.f32 %v1365_v5, %v1351_v36 }
 0x37d   :  { %1369 = vrot.lane.b32.xlu0 %v1367_v51, %s3194_s1 }
 0x38b   :  { %v1375_v53 = vpop.permute.xlu1 %1374 }
 0x38c   :  { %v1377_v54 = vmul.f32 %v1375_v53, %v3548_v3  ;;  %v1378_v56 = vmul.f32 %v1375_v53, %v3546_v55  ;;  %v1958_v62 = vmul.f32 %v1375_v53, %v1197_v19  ;;  %v1959_v60 = vmul.f32 %v1375_v53, %v1198_v17 }
 0x3ef   :  { %v1370_v52 = vpop.permute.xlu0 %1369 }
 0x3f0   :  { %v1372_v41 = vsub.f32 %v3270_v7, %v1370_v52 }
 0x3f2   :  { %1381 = vperm.xlu0 %3091, %v1372_v41  }
 0x3f6   :  { %3172 = vset.pattern.permute.xlu0 %v3195_v63 }
 0x471   :  { %v1382_v4 = vpop.permute.xlu0 %1381 }
 0x472   :  { %v3566_v57 = vadd.f32 %v1382_v4, %v1377_v54  ;;  %v3568_v58 = vadd.f32 %v1382_v4, %v1378_v56  ;;  %v3576_v3 = vadd.f32 %v1958_v62, %v1382_v4  ;;  %v3578_v55 = vadd.f32 %v1959_v60, %v1382_v4  ;;  %v3639_v56 = vld [vmem:[%s3884_s2] sm:$0xf]  ;;  %v3646_v62 = vld [vmem:[%s3884_s2 + $0x8] sm:$0xf] }
 0x474   :  { %v3102_v59 = vpack.i.bf16 %v3568_v58, %v3566_v57  ;;  %v3132_v61 = vpack.i.bf16 %v3578_v55, %v3576_v3  ;;  %v1641_v37 = vpack.c.bf16 %v3568_v58, %v3568_v58  ;;  %v1640_v52 = vpack.c.bf16 %v3566_v57, %v3566_v57 }
 0x476   :  { %3103 = vrot.lane.b32.xlu0 %v3102_v59, %s3184_s18  ;;  %3093 = vrot.lane.b32.xlu1 %v3102_v59, %s3183_s17 }
 0x47a   :  { %3113 = vrot.lane.b32.xlu0 %v3102_v59, %s3187_s23  ;;  %3098 = vrot.lane.b32.xlu1 %v3102_v59, %s3185_s19 }
 0x47e   :  { %3123 = vrot.lane.b32.xlu0 %v3102_v59, %s3189_s25  ;;  %3108 = vrot.lane.b32.xlu1 %v3102_v59, %s3186_s20 }
 0x482   :  { %3133 = vrot.lane.b32.xlu0 %v3132_v61, %s3183_s17  ;;  %3118 = vrot.lane.b32.xlu1 %v3102_v59, %s3188_s24 }
 0x486   :  { %3143 = vrot.lane.b32.xlu0 %v3132_v61, %s3184_s18  ;;  %3128 = vrot.lane.b32.xlu1 %v3102_v59, %s3190_s26 }
 0x48a   :  { %3153 = vrot.lane.b32.xlu0 %v3132_v61, %s3187_s23  ;;  %3138 = vrot.lane.b32.xlu1 %v3132_v61, %s3185_s19 }
 0x48e   :  { %3163 = vrot.lane.b32.xlu0 %v3132_v61, %s3189_s25  ;;  %3148 = vrot.lane.b32.xlu1 %v3132_v61, %s3186_s20 }
 0x492   :  { %3158 = vrot.lane.b32.xlu1 %v3132_v61, %s3188_s24  ;;  %1949 = vperm.xlu0 %3172, %v3270_v7  }
 0x496   :  { %3168 = vrot.lane.b32.xlu1 %v3132_v61, %s3190_s26 }
 0x4e8   :  { %v3104_v6 = vpop.permute.xlu0 %3103  ;;  %v3094_v8 = vpop.permute.xlu1 %3093 }
 0x4e9   :  { %v3106_v18 = vunpack.i.h.bf16 %v3104_v6  ;;  %v3105_v9 = vunpack.i.l.bf16 %v3104_v6  ;;  %v3096_v10 = vunpack.i.h.bf16 %v3094_v8  ;;  %v3095_v11 = vunpack.i.l.bf16 %v3094_v8 }
 0x4ea   :  { %v1646_v8 = vsel %vm1414_vm14, %v1640_v52, 0 }
 0x4eb   :  { %v1516_v12 = vsel %vm205_vm2, %v3105_v9, %v3106_v18  ;;  %v1519_v13 = vsel %vm205_vm2, 0.0, %v3105_v9  ;;  %v1404_v32 = vsel %vm92_vm0, %v3095_v11, %v3096_v10  ;;  %v1407_v0 = vsel %vm92_vm0, 0.0, %v3095_v11 }
 0x4ec   :  { %v1520_v16 = vsel %vm3273_vm3, %v1519_v13, 0.0  ;;  %v1521_v7 = vsel %vm3277_vm4, %v1516_v12, 0.0  ;;  %v1408_v17 = vpack.c.bf16 %v1407_v0, %v1407_v0  ;;  %v1409_v19 = vpack.c.bf16 %v1404_v32, %v1404_v32  ;;  %v3099_v20 = vpop.permute.xlu1 %3098  ;;  %v3114_v23 = vpop.permute.xlu0 %3113 }
 0x4ed   :  { %v3101_v24 = vunpack.i.h.bf16 %v3099_v20  ;;  %v1522_v25 = vpack.c.bf16 %v1520_v16, %v1520_v16  ;;  %v3100_v26 = vunpack.i.l.bf16 %v3099_v20  ;;  %v1523_v28 = vpack.c.bf16 %v1521_v7, %v1521_v7 }
 0x4ee   :  { %2736 = vmatprep.subr.msk.bf16.mxu0 %vm1414_vm14, %v1409_v19  ;;  %v1416_v27 = vsel %vm1414_vm14, %v1408_v17, 0  ;;  %v3116_v30 = vunpack.i.h.bf16 %v3114_v23  ;;  %v3115_v34 = vunpack.i.l.bf16 %v3114_v23  ;;  %v3672_v23 = vld [vmem:[%s3884_s2 + $0xc] sm:$0xf] }
 0x4ef   :  { %1422 = vmatpush1.bf16.msra.mxu0 %v1416_v27  ;;  %v1392_v31 = vsel %vm75_vm6, %v3100_v26, %v3101_v24  ;;  %v1395_v33 = vsel %vm75_vm6, 0.0, %v3100_v26  ;;  %v1528_v42 = vsel %vm1414_vm14, %v1522_v25, 0  ;;  %v3679_v26 = vld [vmem:[%s3884_s2 + $0x10] sm:$0xf] }
 0x4f0   :  { %v3109_v1 = vpop.permute.xlu1 %3108  ;;  %2740 = vmatprep.subr.msk.bf16.mxu0 %vm1414_vm14, %v1523_v28  ;;  %v1396_v35 = vsel %vm3285_vm8, %v1395_v33, 0.0  ;;  %v1397_v36 = vsel %vm3281_vm7, %v1392_v31, 0.0  ;;  %v1701_v45 = vsel %vm394_vm10, %v3116_v30, 0.0  ;;  %v1698_v50 = vsel %vm394_vm10, %v3115_v34, %v3116_v30  ;;  %v3124_v59 = vpop.permute.xlu0 %3123 }
 0x4f1   :  { %v1398_v38 = vpack.c.bf16 %v1396_v35, %v1396_v35  ;;  %v3111_v39 = vunpack.i.h.bf16 %v3109_v1  ;;  %v3110_v40 = vunpack.i.l.bf16 %v3109_v1  ;;  %v1399_v43 = vpack.c.bf16 %v1397_v36, %v1397_v36 }
 0x4f2   :  { %2737 = vmatmul.mubr.msk.bf16.vlgmr.msra.gmra.mrb[40].mxu0 %vm1410_vm15, %v3608_v29  ;;  %v1703_v58 = vsel %vm3277_vm4, %v1701_v45, 0.0  ;;  %v1702_v18 = vsel %vm3273_vm3, %v1698_v50, 0.0  ;;  %v3126_v10 = vunpack.i.h.bf16 %v3124_v59  ;;  %v3125_v19 = vunpack.i.l.bf16 %v3124_v59 }
 0x4f3   :  { %1534 = vmatpush1.bf16.msra.mxu0 %v1528_v42  ;;  %1565 = vmatprep.mubr.bf16.mxu0 %v3182_v2  ;;  %v1580_v46 = vsel %vm274_vm9, %v3110_v40, %v3111_v39  ;;  %v1583_v47 = vsel %vm274_vm9, 0.0, %v3110_v40  ;;  %v1466_v49 = vsel %vm1414_vm14, %v1398_v38, 0  ;;  %v1705_v9 = vpack.c.bf16 %v1703_v58, %v1703_v58 }
 0x4f4   :  { %v3119_v48 = vpop.permute.xlu1 %3118  ;;  %2744 = vmatprep.subr.msk.bf16.mxu0 %vm1414_vm14, %v1641_v37  ;;  %v1584_v5 = vsel %vm3285_vm8, %v1583_v47, 0.0  ;;  %v1585_v51 = vsel %vm3281_vm7, %v1580_v46, 0.0  ;;  %2738 = vmatprep.subr.msk.bf16.mxu1 %vm1414_vm14, %v1399_v43  ;;  %v1704_v7 = vpack.c.bf16 %v1702_v18, %v1702_v18  ;;  %v1829_v17 = vsel %vm524_vm12, %v3126_v10, 0.0  ;;  %v3134_v20 = vpop.permute.xlu0 %3133  ;;  %v3700_v46 = vld [vmem:[%s3884_s2 + $0x14] sm:$0xf] }
 0x4f5   :  { %v1586_v41 = vpack.c.bf16 %v1584_v5, %v1584_v5  ;;  %v3121_v53 = vunpack.i.h.bf16 %v3119_v48  ;;  %v3120_v54 = vunpack.i.l.bf16 %v3119_v48  ;;  %1472 = vmatpush1.bf16.msra.mxu1 %v1466_v49  ;;  %v1587_v4 = vpack.c.bf16 %v1585_v51, %v1585_v51  ;;  %v3707_v5 = vld [vmem:[%s3884_s2 + $0x18] sm:$0xf] }
 0x4f6   :  { %v1831_v31 = vpack.c.bf16 %v1829_v17, %v1829_v17  ;;  %v3136_v33 = vunpack.i.h.bf16 %v3134_v20  ;;  %v1710_v1 = vsel %vm1414_vm14, %v1704_v7, 0  ;;  %v3135_v34 = vunpack.i.l.bf16 %v3134_v20 }
 0x4f7   :  { %v1765_v57 = vsel %vm459_vm11, %v3121_v53, 0.0  ;;  %v1762_v60 = vsel %vm459_vm11, %v3120_v54, %v3121_v53  ;;  %2742 = vmatprep.subr.msk.bf16.mxu1 %vm1414_vm14, %v1587_v4  ;;  %v1592_v12 = vsel %vm1414_vm14, %v1586_v41, 0  ;;  %v1826_v37 = vsel %vm524_vm12, %v3125_v19, %v3126_v10 }
 0x4f8   :  { %v3129_v61 = vpop.permute.xlu1 %3128  ;;  %v1767_v63 = vsel %vm3281_vm7, %v1765_v57, 0.0  ;;  %2739 = vmatmul.mubr.msk.bf16.vlgmr.msra.gmra.mrb[40].mxu1 %vm1410_vm15, %v3639_v56  ;;  %v1766_v13 = vsel %vm3285_vm8, %v1762_v60, 0.0  ;;  %v3144_v39 = vpop.permute.xlu0 %3143  ;;  %v1830_v43 = vpack.c.bf16 %v1826_v37, %v1826_v37  ;;  %v1980_v45 = vsel %vm92_vm0, %v3135_v34, %v3136_v33 }
 0x4f9   :  { %v3131_v6 = vunpack.i.h.bf16 %v3129_v61  ;;  %v1769_v11 = vpack.c.bf16 %v1767_v63, %v1767_v63  ;;  %1629 = vmatprep.mubr.bf16.mxu1 %v3182_v2  ;;  %1598 = vmatpush1.bf16.msra.mxu1 %v1592_v12  ;;  %v3130_v0 = vunpack.i.l.bf16 %v3129_v61  ;;  %v1768_v24 = vpack.c.bf16 %v1766_v13, %v1766_v13  ;;  %v3738_v12 = vld [vmem:[%s3884_s2 + $0x20] sm:$0xf] }
 0x4fa   :  { %2741 = vmatmul.mubr.msk.bf16.vlgmr.msra.gmra.mrb[44].mxu0 %vm1410_vm15, %v3646_v62  ;;  %2746 = vmatprep.subr.msk.bf16.mxu1 %vm1414_vm14, %v1705_v9  ;;  %v3146_v48 = vunpack.i.h.bf16 %v3144_v39  ;;  %v3145_v49 = vunpack.i.l.bf16 %v3144_v39  ;;  %v1985_v53 = vpack.c.bf16 %v1980_v45, %v1980_v45  ;;  %v1836_v54 = vsel %vm1414_vm14, %v1830_v43, 0  ;;  %v3730_v9 = vld [vmem:[%s3884_s2 + $0x1c] sm:$0xf]  ;;  %s3197_s2 = smov 4  }
 0x4fb   :  { %1652 = vmatpush1.bf16.msra.mxu0 %v1646_v8  ;;  %v1891_v32 = vsel %vm587_vm13, %v3131_v6, 0.0  ;;  %1683 = vmatprep.mubr.bf16.mxu0 %v3182_v2  ;;  %v1888_v27 = vsel %vm587_vm13, %v3130_v0, %v3131_v6  ;;  %v1774_v36 = vsel %vm1414_vm14, %v1768_v24, 0  ;;  %v1983_v4 = vsel %vm92_vm0, 0.0, %v3135_v34 }
 0x4fc   :  { %2748 = vmatprep.subr.msk.bf16.mxu0 %vm1414_vm14, %v1769_v11  ;;  %v3139_v16 = vpop.permute.xlu1 %3138  ;;  %v1893_v25 = vsel %vm3277_vm4, %v1891_v32, 0.0  ;;  %v1892_v38 = vsel %vm3273_vm3, %v1888_v27, 0.0  ;;  %v2084_v57 = vsel %vm205_vm2, %v3145_v49, %v3146_v48  ;;  %v1984_v63 = vpack.c.bf16 %v1983_v4, %v1983_v4  ;;  %v3154_v6 = vpop.permute.xlu0 %3153 }
 0x4fd   :  { %v3141_v28 = vunpack.i.h.bf16 %v3139_v16  ;;  %v3140_v30 = vunpack.i.l.bf16 %v3139_v16  ;;  %v1895_v35 = vpack.c.bf16 %v1893_v25, %v1893_v25  ;;  %v1894_v47 = vpack.c.bf16 %v1892_v38, %v1892_v38 }
 0x4fe   :  { %v2089_v8 = vsel %vm3277_vm4, %v2084_v57, 0.0  ;;  %v2087_v10 = vsel %vm205_vm2, 0.0, %v3145_v49  ;;  %v3156_v13 = vunpack.i.h.bf16 %v3154_v6  ;;  %v1987_v0 = vsel %vm1414_vm14, %v1984_v63, 0 }
 0x4ff   :  { %v1968_v40 = vsel %vm75_vm6, %v3140_v30, %v3141_v28  ;;  %v1971_v51 = vsel %vm75_vm6, 0.0, %v3140_v30  ;;  %v1900_v58 = vsel %vm1414_vm14, %v1894_v47, 0  ;;  %v2091_v16 = vpack.c.bf16 %v2089_v8, %v2089_v8 }
 0x500   :  { %2743 = vmatmul.mubr.msk.bf16.vlgmr.msra.gmra.mrb[44].mxu1 %vm1410_vm15, %v3672_v23  ;;  %v3149_v42 = vpop.permute.xlu1 %3148  ;;  %v1973_v50 = vsel %vm3281_vm7, %v1968_v40, 0.0  ;;  %v1972_v60 = vsel %vm3285_vm8, %v1971_v51, 0.0  ;;  %v2088_v7 = vsel %vm3273_vm3, %v2087_v10, 0.0  ;;  %v2260_v24 = vsel %vm394_vm10, %v3156_v13, 0.0  ;;  %v3164_v34 = vpop.permute.xlu0 %3163 }
 0x501   :  { %1716 = vmatpush1.bf16.msra.mxu1 %v1710_v1  ;;  %1747 = vmatprep.mubr.bf16.mxu1 %v3182_v2  ;;  %v3151_v52 = vunpack.i.h.bf16 %v3149_v42  ;;  %v3150_v41 = vunpack.i.l.bf16 %v3149_v42  ;;  %v1975_v59 = vpack.c.bf16 %v1973_v50, %v1973_v50  ;;  %v1974_v18 = vpack.c.bf16 %v1972_v60, %v1972_v60 }
 0x502   :  { %2745 = vmatmul.mubr.msk.bf16.vlgmr.msra.gmra.mrb[48].mxu0 %vm1410_vm15, %v3679_v26  ;;  %2750 = vmatprep.subr.msk.bf16.mxu1 %vm1414_vm14, %v1831_v31  ;;  %v3155_v25 = vunpack.i.l.bf16 %v3154_v6  ;;  %v2090_v28 = vpack.c.bf16 %v2088_v7, %v2088_v7  ;;  %v2262_v31 = vsel %vm3277_vm4, %v2260_v24, 0.0  ;;  %v3166_v39 = vunpack.i.h.bf16 %v3164_v34 }
 0x503   :  { %1780 = vmatpush1.bf16.msra.mxu0 %v1774_v36  ;;  %1811 = vmatprep.mubr.bf16.mxu0 %v3182_v2  ;;  %v2145_v61 = vsel %vm274_vm9, %v3150_v41, %v3151_v52  ;;  %v2148_v32 = vsel %vm274_vm9, 0.0, %v3150_v41  ;;  %v2034_v17 = vsel %vm1414_vm14, %v1974_v18, 0  ;;  %v2203_v36 = vpack.c.bf16 %v3578_v55, %v3578_v55 }
 0x504   :  { %2752 = vmatprep.subr.msk.bf16.mxu0 %vm1414_vm14, %v1895_v35  ;;  %v2150_v11 = vsel %vm3281_vm7, %v2145_v61, 0.0  ;;  %v2149_v20 = vsel %vm3285_vm8, %v2148_v32, 0.0  ;;  %v3159_v27 = vpop.permute.xlu1 %3158  ;;  %v2257_v1 = vsel %vm394_vm10, %v3155_v25, %v3156_v13  ;;  %v2093_v35 = vsel %vm1414_vm14, %v2090_v28, 0 }
 0x505   :  { %v2152_v19 = vpack.c.bf16 %v2150_v11, %v2150_v11  ;;  %v2151_v30 = vpack.c.bf16 %v2149_v20, %v2149_v20  ;;  %v3161_v33 = vunpack.i.h.bf16 %v3159_v27  ;;  %v2264_v37 = vpack.c.bf16 %v2262_v31, %v2262_v31 }
 0x506   :  { %v3160_v42 = vunpack.i.l.bf16 %v3159_v27  ;;  %v2202_v55 = vpack.c.bf16 %v3576_v3, %v3576_v3  ;;  %v2382_v47 = vsel %vm524_vm12, %v3166_v39, 0.0  ;;  %v3165_v48 = vunpack.i.l.bf16 %v3164_v34 }
 0x507   :  { %v2154_v38 = vsel %vm1414_vm14, %v2151_v30, 0  ;;  %v2321_v40 = vsel %vm459_vm11, %v3161_v33, 0.0  ;;  %v2384_v41 = vpack.c.bf16 %v2382_v47, %v2382_v47 }
 0x508   :  { %2747 = vmatmul.mubr.msk.bf16.vlgmr.msra.gmra.mrb[48].mxu1 %vm1410_vm15, %v3700_v46  ;;  %v3169_v43 = vpop.permute.xlu1 %3168  ;;  %v2318_v49 = vsel %vm459_vm11, %v3160_v42, %v3161_v33  ;;  %v2205_v52 = vsel %vm1414_vm14, %v2202_v55, 0 }
 0x509   :  { %1842 = vmatpush1.bf16.msra.mxu1 %v1836_v54  ;;  %1873 = vmatprep.mubr.bf16.mxu1 %v3182_v2  ;;  %v3171_v50 = vunpack.i.h.bf16 %v3169_v43  ;;  %v2322_v3 = vsel %vm3285_vm8, %v2318_v49, 0.0  ;;  %v3170_v54 = vunpack.i.l.bf16 %v3169_v43 }
 0x50a   :  { %2749 = vmatmul.mubr.msk.bf16.vlgmr.msra.gmra.mrb[52].mxu0 %vm1410_vm15, %v3707_v5  ;;  %2754 = vmatprep.subr.msk.bf16.mxu1 %vm1414_vm14, %v1985_v53  ;;  %v2324_v4 = vpack.c.bf16 %v2322_v3, %v2322_v3 }
 0x50b   :  { %1906 = vmatpush1.bf16.msra.mxu0 %v1900_v58  ;;  %1937 = vmatprep.mubr.bf16.mxu0 %v3182_v2  ;;  %v2441_v53 = vsel %vm587_vm13, %v3171_v50, 0.0  ;;  %v2438_v58 = vsel %vm587_vm13, %v3170_v54, %v3171_v50 }
 0x50c   :  { %2756 = vmatprep.subr.msk.bf16.mxu0 %vm1414_vm14, %v1975_v59  ;;  %v2327_v57 = vsel %vm1414_vm14, %v2324_v4, 0  ;;  %v2442_v61 = vsel %vm3273_vm3, %v2438_v58, 0.0 }
 0x50d   :  { %v2444_v15 = vpack.c.bf16 %v2442_v61, %v2442_v61 }
 0x510   :  { %2751 = vmatmul.mubr.msk.bf16.vlgmr.msra.gmra.mrb[52].mxu1 %vm1410_vm15, %v3730_v9 }
 0x511   :  { %1993 = vmatpush1.bf16.msra.mxu1 %v1987_v0  ;;  %2024 = vmatprep.mubr.bf16.mxu1 %v3182_v2 }
 0x512   :  { %2753 = vmatmul.mubr.msk.bf16.vlgmr.msra.gmra.mrb[56].mxu0 %vm1410_vm15, %v3738_v12  ;;  %2758 = vmatprep.subr.msk.bf16.mxu1 %vm1414_vm14, %v2091_v16 }
 0x513   :  { %2040 = vmatpush1.bf16.msra.mxu0 %v2034_v17  ;;  %2071 = vmatprep.mubr.bf16.mxu0 %v3182_v2 }
 0x514   :  { %2760 = vmatprep.subr.msk.bf16.mxu0 %vm1414_vm14, %v2152_v19 }
 0x518   :  { %2755 = vmatmul.mubr.msk.bf16.vlgmr.msra.gmra.mrb[56].mxu1 %vm1410_vm15, %v3608_v29  ;;  %v2261_v29 = vsel %vm3273_vm3, %v2257_v1, 0.0 }
 0x519   :  { %2099 = vmatpush1.bf16.msra.mxu1 %v2093_v35  ;;  %2130 = vmatprep.mubr.bf16.mxu1 %v3182_v2  ;;  %v2263_v45 = vpack.c.bf16 %v2261_v29, %v2261_v29 }
 0x51a   :  { %2757 = vmatmul.mubr.msk.bf16.vlgmr.msra.gmra.mrb[60].mxu0 %vm1410_vm15, %v3639_v56  ;;  %2762 = vmatprep.subr.msk.bf16.mxu1 %vm1414_vm14, %v2203_v36  ;;  %v2323_v56 = vsel %vm3281_vm7, %v2321_v40, 0.0 }
 0x51b   :  { %2160 = vmatpush1.bf16.msra.mxu0 %v2154_v38  ;;  %2191 = vmatprep.mubr.bf16.mxu0 %v3182_v2  ;;  %v2325_v51 = vpack.c.bf16 %v2323_v56, %v2323_v56  ;;  %v2266_v21 = vsel %vm1414_vm14, %v2263_v45, 0  ;;  %v3848_v45 = vpop.permute.xlu0 %1949 }
 0x51c   :  { %2764 = vmatprep.subr.msk.bf16.mxu0 %vm1414_vm14, %v2264_v37 }
 0x520   :  { %2759 = vmatmul.mubr.msk.bf16.vlgmr.msra.gmra.mrb[60].mxu1 %vm1410_vm15, %v3646_v62  ;;  %v2379_v62 = vsel %vm524_vm12, %v3165_v48, %v3166_v39 }
 0x521   :  { %2211 = vmatpush1.bf16.msra.mxu1 %v2205_v52  ;;  %2242 = vmatprep.mubr.bf16.mxu1 %v3182_v2  ;;  %v2383_v22 = vpack.c.bf16 %v2379_v62, %v2379_v62 }
 0x522   :  { %2761 = vmatmul.mubr.msk.bf16.vlgmr.msra.gmra.mrb[64].mxu0 %vm1410_vm15, %v3672_v23  ;;  %2766 = vmatprep.subr.msk.bf16.mxu1 %vm1414_vm14, %v2325_v51  ;;  %v2443_v23 = vsel %vm3277_vm4, %v2441_v53, 0.0 }
 0x523   :  { %2272 = vmatpush1.bf16.msra.mxu0 %v2266_v21  ;;  %2303 = vmatprep.mubr.bf16.mxu0 %v3182_v2  ;;  %v2445_v59 = vpack.c.bf16 %v2443_v23, %v2443_v23  ;;  %v2386_v60 = vsel %vm1414_vm14, %v2383_v22, 0 }
 0x524   :  { %2768 = vmatprep.subr.msk.bf16.mxu0 %vm1414_vm14, %v2384_v41 }
 0x528   :  { %2763 = vmatmul.mubr.msk.bf16.vlgmr.msra.gmra.mrb[64].mxu1 %vm1410_vm15, %v3679_v26  ;;  %v2447_v26 = vsel %vm1414_vm14, %v2444_v15, 0 }
 0x529   :  { %2333 = vmatpush1.bf16.msra.mxu1 %v2327_v57  ;;  %2364 = vmatprep.mubr.bf16.mxu1 %v3182_v2 }
 0x52a   :  { %2765 = vmatmul.mubr.msk.bf16.vlgmr.msra.gmra.mrb[68].mxu0 %vm1410_vm15, %v3700_v46  ;;  %2770 = vmatprep.subr.msk.bf16.mxu1 %vm1414_vm14, %v2445_v59 }
 0x52b   :  { %2392 = vmatpush1.bf16.msra.mxu0 %v2386_v60  ;;  %2423 = vmatprep.mubr.bf16.mxu0 %v3182_v2 }
 0x52c   :  { %2958 = vmatprep.subr.bf16.mxu0 %v3191_v44 }
 0x530   :  { %2767 = vmatmul.mubr.msk.bf16.vlgmr.msra.gmra.mrb[68].mxu1 %vm1410_vm15, %v3707_v5 }
 0x531   :  { %2453 = vmatpush1.bf16.msra.mxu1 %v2447_v26  ;;  %2484 = vmatprep.mubr.bf16.mxu1 %v3182_v2 }
 0x532   :  { %2769 = vmatmul.mubr.msk.bf16.vlgmr.msra.gmra.mrb[72].mxu0 %vm1410_vm15, %v3730_v9  ;;  %2974 = vmatprep.subr.bf16.mxu1 %v3191_v44 }
 0x533   :  { %2959 = vmatpush3.bf16.msra.mxu0 %v3191_v44 }
 0x534   :  { %2960 = vmatprep.subr.bf16.mxu0 %v3191_v44 }
 0x537   :  { %2961 = vmatpush3.bf16.msra.mxu0 %v3191_v44 }
 0x538   :  { %2771 = vmatmul.mubr.msk.bf16.vlgmr.msra.gmra.mrb[72].mxu1 %vm1410_vm15, %v3738_v12  ;;  %2962 = vmatprep.subr.bf16.mxu0 %v3191_v44 }
 0x539   :  { %2975 = vmatpush3.bf16.msra.mxu1 %v3191_v44 }
 0x53a   :  { %2976 = vmatprep.subr.bf16.mxu1 %v3191_v44 }
 0x53b   :  { %2963 = vmatpush3.bf16.msra.mxu0 %v3191_v44 }
 0x53c   :  { %2964 = vmatprep.subr.bf16.mxu0 %v3191_v44 }
 0x53d   :  { %2977 = vmatpush3.bf16.msra.mxu1 %v3191_v44 }
 0x53e   :  { %2978 = vmatprep.subr.bf16.mxu1 %v3191_v44 }
 0x53f   :  { %2965 = vmatpush3.bf16.msra.mxu0 %v3191_v44 }
 0x540   :  { %2966 = vmatprep.subr.bf16.mxu0 %v3191_v44 }
 0x541   :  { %2979 = vmatpush3.bf16.msra.mxu1 %v3191_v44 }
 0x542   :  { %2980 = vmatprep.subr.bf16.mxu1 %v3191_v44 }
 0x543   :  { %2967 = vmatpush3.bf16.msra.mxu0 %v3191_v44 }
 0x544   :  { %2968 = vmatprep.subr.bf16.mxu0 %v3191_v44 }
 0x545   :  { %2981 = vmatpush3.bf16.msra.mxu1 %v3191_v44 }
 0x546   :  { %2982 = vmatprep.subr.bf16.mxu1 %v3191_v44 }
 0x547   :  { %2969 = vmatpush3.bf16.msra.mxu0 %v3191_v44 }
 0x548   :  { %2970 = vmatprep.subr.bf16.mxu0 %v3191_v44 }
 0x549   :  { %2983 = vmatpush3.bf16.msra.mxu1 %v3191_v44 }
 0x54a   :  { %2984 = vmatprep.subr.bf16.mxu1 %v3191_v44 }
 0x54b   :  { %2971 = vmatpush3.bf16.msra.mxu0 %v3191_v44 }
 0x54c   :  { %2972 = vmatprep.subr.bf16.mxu0 %v3191_v44 }
 0x54d   :  { %2985 = vmatpush3.bf16.msra.mxu1 %v3191_v44 }
 0x54e   :  { %2986 = vmatprep.subr.bf16.mxu1 %v3191_v44 }
 0x54f   :  { %2973 = vmatpush3.bf16.msra.mxu0 %v3191_v44 }
 0x551   :  { %2987 = vmatpush3.bf16.msra.mxu1 %v3191_v44 }
 0x552   :  { %2988 = vmatprep.subr.bf16.mxu1 %v3191_v44 }
 0x555   :  { %2989 = vmatpush3.bf16.msra.mxu1 %v3191_v44 }
 0x5c5   :  { %v1455_v2 = vpop.f32.mrb[40].mxu0 }
 0x5c6   :  { %v1457_v14 = vpop.f32.mrb[41].mxu0 }
 0x5c7   :  { %v1459_v46 = vpop.f32.mrb[42].mxu0 }
 0x5c8   :  { %v1460_v5 = vpop.f32.mrb[43].mxu0 }
 0x5cb   :  { %v1505_v63 = vpop.f32.mrb[40].mxu1 }
 0x5cc   :  { %v1506_v6 = vadd.f32 %v1505_v63, %v1455_v2  ;;  %v1507_v8 = vpop.f32.mrb[41].mxu1 }
 0x5cd   :  { %v1567_v18 = vpop.f32.mrb[44].mxu0  ;;  %v1508_v9 = vadd.f32 %v1507_v8, %v1457_v14  ;;  %v1509_v10 = vpop.f32.mrb[42].mxu1 }
 0x5ce   :  { %v1569_v11 = vpop.f32.mrb[45].mxu0  ;;  %v1574_v12 = vadd.f32 %v1567_v18, %v1506_v6  ;;  %v1510_v13 = vpop.f32.mrb[43].mxu1 }
 0x5cf   :  { %v1571_v32 = vpop.f32.mrb[46].mxu0  ;;  %v1575_v0 = vadd.f32 %v1569_v11, %v1508_v9 }
 0x5d0   :  { %v1572_v16 = vpop.f32.mrb[47].mxu0 }
 0x5d3   :  { %v1631_v7 = vpop.f32.mrb[44].mxu1 }
 0x5d4   :  { %v1638_v17 = vadd.f32 %v1631_v7, %v1574_v12  ;;  %v1633_v19 = vpop.f32.mrb[45].mxu1 }
 0x5d5   :  { %v1685_v44 = vpop.f32.mrb[48].mxu0  ;;  %v1639_v20 = vadd.f32 %v1633_v19, %v1575_v0  ;;  %v1635_v24 = vpop.f32.mrb[46].mxu1 }
 0x5d6   :  { %v1687_v25 = vpop.f32.mrb[49].mxu0  ;;  %v1692_v27 = vadd.f32 %v1685_v44, %v1638_v17  ;;  %v1636_v28 = vpop.f32.mrb[47].mxu1 }
 0x5d7   :  { %v1689_v30 = vpop.f32.mrb[50].mxu0  ;;  %v1693_v31 = vadd.f32 %v1687_v25, %v1639_v20 }
 0x5d8   :  { %v1690_v33 = vpop.f32.mrb[51].mxu0 }
 0x5db   :  { %v1749_v1 = vpop.f32.mrb[48].mxu1 }
 0x5dc   :  { %v1756_v34 = vadd.f32 %v1749_v1, %v1692_v27  ;;  %v1751_v35 = vpop.f32.mrb[49].mxu1 }
 0x5dd   :  { %v1813_v36 = vpop.f32.mrb[52].mxu0  ;;  %v1757_v37 = vadd.f32 %v1751_v35, %v1693_v31  ;;  %v1753_v38 = vpop.f32.mrb[50].mxu1 }
 0x5de   :  { %v1815_v39 = vpop.f32.mrb[53].mxu0  ;;  %v1820_v40 = vadd.f32 %v1813_v36, %v1756_v34  ;;  %v1754_v42 = vpop.f32.mrb[51].mxu1 }
 0x5df   :  { %v1817_v29 = vpop.f32.mrb[54].mxu0  ;;  %v1821_v43 = vadd.f32 %v1815_v39, %v1757_v37 }
 0x5e0   :  { %v1818_v55 = vpop.f32.mrb[55].mxu0 }
 0x5e3   :  { %v1875_v56 = vpop.f32.mrb[52].mxu1 }
 0x5e4   :  { %v1882_v47 = vadd.f32 %v1875_v56, %v1820_v40  ;;  %v1877_v48 = vpop.f32.mrb[53].mxu1 }
 0x5e5   :  { %v1939_v49 = vpop.f32.mrb[56].mxu0  ;;  %v1883_v50 = vadd.f32 %v1877_v48, %v1821_v43  ;;  %v1879_v51 = vpop.f32.mrb[54].mxu1 }
 0x5e6   :  { %v1941_v52 = vpop.f32.mrb[57].mxu0  ;;  %v1946_v41 = vadd.f32 %v1939_v49, %v1882_v47  ;;  %v1880_v21 = vpop.f32.mrb[55].mxu1 }
 0x5e7   :  { %v1943_v3 = vpop.f32.mrb[58].mxu0  ;;  %v1947_v53 = vadd.f32 %v1941_v52, %v1883_v50 }
 0x5e8   :  { %v1944_v54 = vpop.f32.mrb[59].mxu0  ;;  %v1952_v62 = vadd.f32 %v3848_v45, %v1946_v41 }
 0x5e9   :  { %v1953_v4 = vadd.f32 %v3848_v45, %v1947_v53 }
 0x5ea   :  { %v3854_v58 = vmax.f32 %v1952_v62, 0.0 }
 0x5eb   :  { %v2026_v23 = vpop.f32.mrb[56].mxu1  ;;  %v3852_v22 = vmax.f32 %v1953_v4, 0.0 }
 0x5ec   :  { %v2028_v59 = vpop.f32.mrb[57].mxu1  ;;  %v1956_v63 = vmul.f32 %v3854_v58, %v3854_v58 }
 0x5ed   :  { %v2073_v57 = vpop.f32.mrb[60].mxu0  ;;  %2640 = vmatprep.mubr.f32.mxu1 %v3852_v22  ;;  %v2030_v60 = vpop.f32.mrb[58].mxu1  ;;  %v1957_v26 = vmul.f32 %v3852_v22, %v3852_v22 }
 0x5ee   :  { %v2074_v61 = vadd.f32 %v2073_v57, %v2026_v23  ;;  %v2075_v15 = vpop.f32.mrb[61].mxu0  ;;  %2641 = vmatmul.mubr.f32.vlgmr.msra.gmra.mrb[76].mxu1 %v3854_v58  ;;  %v2031_v2 = vpop.f32.mrb[59].mxu1 }
 0x5ef   :  { %v2076_v14 = vadd.f32 %v2075_v15, %v2028_v59  ;;  %v2077_v46 = vpop.f32.mrb[62].mxu0  ;;  %2645 = vmatprep.mubr.f32.mxu1 %v1957_v26 }
 0x5f0   :  { %v2078_v5 = vpop.f32.mrb[63].mxu0 }
 0x5f2   :  { %2646 = vmatmul.mubr.f32.gmra.mrb[78].mxu1 %v1956_v63 }
 0x5f3   :  { %v2132_v6 = vpop.f32.mrb[60].mxu1 }
 0x5f4   :  { %v2139_v8 = vadd.f32 %v2132_v6, %v2074_v61  ;;  %v2134_v18 = vpop.f32.mrb[61].mxu1 }
 0x5f5   :  { %v2193_v9 = vpop.f32.mrb[64].mxu0  ;;  %v2140_v10 = vadd.f32 %v2134_v18, %v2076_v14  ;;  %v2136_v11 = vpop.f32.mrb[62].mxu1 }
 0x5f6   :  { %v2195_v12 = vpop.f32.mrb[65].mxu0  ;;  %v2200_v13 = vadd.f32 %v2193_v9, %v2139_v8  ;;  %v2137_v32 = vpop.f32.mrb[63].mxu1 }
 0x5f7   :  { %v2197_v0 = vpop.f32.mrb[66].mxu0  ;;  %v2201_v16 = vadd.f32 %v2195_v12, %v2140_v10  ;;  %v3196_v12 = vmov 4  }
 0x5f8   :  { %v2198_v7 = vpop.f32.mrb[67].mxu0  ;;  %3173 = vset.pattern.permute.xlu1 %v3196_v12  ;;  %v3181_v0 = vld [vmem:[%s3882_s3] sm:$0xff] }
 0x5f9   :  { %v3199_v7 = vmov 5  }
 0x5fa   :  { %3174 = vset.pattern.permute.xlu0 %v3199_v7 }
 0x5fb   :  { %v2244_v17 = vpop.f32.mrb[64].mxu1 }
 0x5fc   :  { %v2251_v19 = vadd.f32 %v2244_v17, %v2200_v13  ;;  %v2246_v44 = vpop.f32.mrb[65].mxu1 }
 0x5fd   :  { %v2305_v20 = vpop.f32.mrb[68].mxu0  ;;  %v2252_v24 = vadd.f32 %v2246_v44, %v2201_v16  ;;  %v2248_v25 = vpop.f32.mrb[66].mxu1 }
 0x5fe   :  { %v2307_v27 = vpop.f32.mrb[69].mxu0  ;;  %v2312_v28 = vadd.f32 %v2305_v20, %v2251_v19  ;;  %v2249_v30 = vpop.f32.mrb[67].mxu1 }
 0x5ff   :  { %v2309_v31 = vpop.f32.mrb[70].mxu0  ;;  %v2313_v33 = vadd.f32 %v2307_v27, %v2252_v24 }
 0x600   :  { %v2310_v1 = vpop.f32.mrb[71].mxu0 }
 0x603   :  { %v2366_v34 = vpop.f32.mrb[68].mxu1 }
 0x604   :  { %v2373_v35 = vadd.f32 %v2366_v34, %v2312_v28  ;;  %v2368_v36 = vpop.f32.mrb[69].mxu1 }
 0x605   :  { %v2425_v37 = vpop.f32.mrb[72].mxu0  ;;  %v2374_v38 = vadd.f32 %v2368_v36, %v2313_v33  ;;  %v2370_v39 = vpop.f32.mrb[70].mxu1 }
 0x606   :  { %v2427_v40 = vpop.f32.mrb[73].mxu0  ;;  %v2432_v42 = vadd.f32 %v2425_v37, %v2373_v35  ;;  %v2371_v29 = vpop.f32.mrb[71].mxu1 }
 0x607   :  { %v2429_v43 = vpop.f32.mrb[74].mxu0  ;;  %v2433_v55 = vadd.f32 %v2427_v40, %v2374_v38 }
 0x608   :  { %v2430_v56 = vpop.f32.mrb[75].mxu0 }
 0x60b   :  { %v2486_v47 = vpop.f32.mrb[72].mxu1 }
 0x60c   :  { %v2493_v48 = vadd.f32 %v2486_v47, %v2432_v42  ;;  %v2488_v49 = vpop.f32.mrb[73].mxu1 }
 0x60d   :  { %v2494_v50 = vadd.f32 %v2488_v49, %v2433_v55  ;;  %v2490_v51 = vpop.f32.mrb[74].mxu1 }
 0x60e   :  { %v2495_v52 = vadd.f32 %v2493_v48, %v3848_v45  ;;  %v2491_v41 = vpop.f32.mrb[75].mxu1 }
 0x60f   :  { %v2496_v21 = vadd.f32 %v2494_v50, %v3848_v45 }
 0x610   :  { %v2497_v53 = vmax.f32 %v2495_v52, 0.0 }
 0x611   :  { %v2498_v3 = vmax.f32 %v2496_v21, 0.0 }
 0x612   :  { %v2499_v62 = vmul.f32 %v2497_v53, %v2497_v53 }
 0x613   :  { %2565 = vmatprep.mubr.f32.mxu0 %v2498_v3  ;;  %v2500_v54 = vmul.f32 %v2498_v3, %v2498_v3 }
 0x614   :  { %2566 = vmatmul.mubr.f32.vlgmr.msra.gmra.mrb[76].mxu0 %v2497_v53 }
 0x615   :  { %2570 = vmatprep.mubr.f32.mxu0 %v2500_v54 }
 0x618   :  { %2571 = vmatmul.mubr.f32.gmra.mrb[78].mxu0 %v2499_v62 }
 0x6c1   :  { %v2920_v4 = vpop.f32.mrb[76].mxu1 }
 0x6c2   :  { %v2921_v23 = vpop.f32.mrb[77].mxu1 }
 0x6c3   :  { %v2922_v59 = vadd.f32 %v2921_v23, %v2920_v4 }
 0x6c5   :  { %v2923_v57 = vpop.f32.mrb[78].mxu1 }
 0x6c6   :  { %v2924_v60 = vpop.f32.mrb[79].mxu1 }
 0x6c7   :  { %v2925_v61 = vadd.f32 %v2924_v60, %v2923_v57 }
 0x6e7   :  { %v2882_v15 = vpop.f32.mrb[76].mxu0 }
 0x6e8   :  { %v2883_v26 = vpop.f32.mrb[77].mxu0 }
 0x6e9   :  { %v2884_v2 = vadd.f32 %v2883_v26, %v2882_v15 }
 0x6eb   :  { %v2643_v14 = vadd.f32 %v2922_v59, %v2884_v2  ;;  %v2885_v46 = vpop.f32.mrb[78].mxu0 }
 0x6ec   :  { %v2886_v45 = vpop.f32.mrb[79].mxu0 }
 0x6ed   :  { %v2651_v5 = vmul.f32 0.001953125, %v2643_v14  ;;  %v2887_v63 = vadd.f32 %v2886_v45, %v2885_v46 }
 0x6ef   :  { %v2648_v6 = vadd.f32 %v2925_v61, %v2887_v63  ;;  %v2653_v8 = vmul.f32 %v2651_v5, %v2651_v5 }
 0x6f1   :  { %v2652_v18 = vmul.f32 0.001953125, %v2648_v6 }
 0x6f3   :  { %v2654_v9 = vsub.f32 %v2652_v18, %v2653_v8 }
 0x6f5   :  { %v2655_v10 = vmax.f32 %v2654_v9, 0.0 }
 0x6f7   :  { %v2656_v11 = vadd.f32 1e-05, %v2655_v10 }
 0x6f9   :  { %3179 = vrsqrt.f32 %v2656_v11 }
 0x703   :  { %v3180_v13 = vpop.eup %3179 }
 0x704   :  { %2659 = vrot.lane.b32.xlu1 %v3180_v13, %s3197_s2 }
 0x776   :  { %v2660_v32 = vpop.permute.xlu1 %2659 }
 0x777   :  { %v2662_v16 = vmul.f32 %v3181_v0, %v2660_v32 }
 0x779   :  { %2664 = vrot.lane.b32.xlu1 %v2662_v16, %s3198_s13 }
 0x77d   :  { %2674 = vperm.xlu1 %3173, %v2662_v16  }
 0x7eb   :  { %v2665_v17 = vpop.permute.xlu1 %2664 }
 0x7ec   :  { %v2667_v19 = vmul.f32 %v2665_v17, %v2651_v5 }
 0x7ee   :  { %2669 = vrot.lane.b32.xlu0 %v2667_v19, %s3200_s14 }
 0x7fc   :  { %v2675_v24 = vpop.permute.xlu1 %2674 }
 0x7fd   :  { %v2677_v25 = vmul.f32 %v2675_v24, %v3854_v58  ;;  %v2678_v27 = vmul.f32 %v2675_v24, %v3852_v22  ;;  %v2688_v28 = vmul.f32 %v2675_v24, %v2497_v53  ;;  %v2689_v30 = vmul.f32 %v2675_v24, %v2498_v3 }
 0x860   :  { %v2670_v44 = vpop.permute.xlu0 %2669 }
 0x861   :  { %v2672_v20 = vsub.f32 %v3181_v0, %v2670_v44 }
 0x863   :  { %2681 = vperm.xlu0 %3174, %v2672_v20  }
 0x8e2   :  { %v2682_v31 = vpop.permute.xlu0 %2681 }
 0x8e3   :  { %v2684_v33 = vadd.f32 %v2682_v31, %v2677_v25  ;;  %v2685_v1 = vadd.f32 %v2682_v31, %v2678_v27  ;;  %v2690_v34 = vadd.f32 %v2688_v28, %v2682_v31  ;;  %v2691_v35 = vadd.f32 %v2689_v30, %v2682_v31 }
 0x8e5   :  { %2686 = vst [vmem:[%s3885_s4] sm:$0xff] %v2684_v33  ;;  %2687 = vst [vmem:[%s3885_s4 + $0x8] sm:$0xff] %v2685_v1 }
 0x8e6   :  { %2772 = vst [vmem:[%s3885_s4 + $0x10] sm:$0xff] %v2690_v34  ;;  %2773 = vst [vmem:[%s3885_s4 + $0x18] sm:$0xff] %v2691_v35 }

</bundles_post_ra>
